<compile_context>
chip_gen: v7x
topology: tpu7x:2x2x1
jax: 0.10.0
libtpu: 0.0.40
codegen_flags: <defaults>
</compile_context>

<pallas_src>
import functools

import jax
import jax.numpy as jnp
from jax import lax
from jax.experimental import pallas as pl
from jax.experimental.pallas import tpu as pltpu


def _vq_kernel(x_ref, emb_ref, e2_ref, q_ref, idx_ref, cnt_ref, sq_ref):
    """One tile of flattened vectors against the full codebook.

    x_ref  : (TN, dim)        f32  tile of flattened inputs
    emb_ref: (n_codes, dim)   f32  full codebook (constant across grid)
    e2_ref : (n_codes, 1)     f32  precomputed ||e||^2 (constant across grid)
    q_ref  : (TN, dim)        f32  quantized vectors (selected codebook rows)
    idx_ref: (1, 1, TN)       i32  selected code per row (lane-dense)
    cnt_ref: (1, n_codes, 1)  f32  per-tile code-usage histogram
    sq_ref : (1, 1, 1)        f32  per-tile sum of squared error
    """
    x = x_ref[...]                      # (TN, dim)
    emb = emb_ref[...]                  # (n_codes, dim)
    n_codes = emb.shape[0]

    # Squared distance up to the per-row constant ||x||^2 (irrelevant for the
    # argmin):  dist[c, n] = ||e_c||^2 - 2 <e_c, x_n>.
    # Codes sit on sublanes, tokens on lanes -> row-argmin is lane-dense.
    ex = lax.dot_general(emb, x, (((1,), (1,)), ((), ())),
                         preferred_element_type=jnp.float32)        # (n_codes, TN)
    dist = e2_ref[...] - 2.0 * ex                                    # (n_codes, TN)

    # argmin over codes with first-occurrence tie-break (matches the torch
    # (-distance).max(1) / jnp.argmax(-dist) behaviour).
    code_ids = lax.broadcasted_iota(jnp.int32, dist.shape, 0)        # (n_codes, TN)
    dist_min = jnp.min(dist, axis=0, keepdims=True)                  # (1, TN)
    idx_row = jnp.min(jnp.where(dist == dist_min, code_ids, n_codes),
                      axis=0, keepdims=True)                         # (1, TN) i32

    onehot = (code_ids == idx_row).astype(jnp.float32)               # (n_codes, TN)
    # Gather of the selected codebook rows as an MXU matmul (exact: 0/1 weights).
    quant = lax.dot_general(onehot, emb, (((0,), (0,)), ((), ())),
                            preferred_element_type=jnp.float32)      # (TN, dim)

    q_ref[...] = quant
    idx_ref[...] = idx_row[None]                                     # (1, 1, TN)

    # Per-tile partials (reduced in the wrapper) -> grid axis can be parallel.
    cnt_ref[...] = jnp.sum(onehot, axis=1, keepdims=True)[None]      # (1, n_codes, 1)
    d = quant - x
    sq_ref[...] = jnp.sum(d * d, keepdims=True)[None]                # (1, 1, 1)


def _pick_tile(n_flat, tile_n):
    """Largest row tile <= tile_n that divides n_flat and is a multiple of 8."""
    tn = min(tile_n, n_flat)
    tn -= tn % 8
    while tn > 8 and n_flat % tn != 0:
        tn -= 8
    if tn < 8 or n_flat % tn != 0:
        raise ValueError(
            f"flattened row count {n_flat} must be tileable by a multiple of 8")
    return tn


@functools.partial(jax.jit, static_argnames=("n_groups", "tile_n"))
def vector_quantize_ema_forward(x, embedding, *, n_groups, tile_n=512):
    """Eval-mode forward of VectorQuantizeEMA.

    x        : (tokens, d_latent) float32
    embedding: (n_codes, dim)     float32, dim = d_latent // n_groups
    returns dict(z, diff, codes, ppl) matching the PyTorch module's outputs.
    """
    n_codes, dim = embedding.shape
    d_latent = x.shape[-1]
    assert d_latent == n_groups * dim

    x_ = x.reshape(-1, dim).astype(jnp.float32)
    emb = embedding.astype(jnp.float32)
    # Hoisted out of the kernel: codebook norm is grid-invariant.
    e2 = jnp.sum(emb * emb, axis=1, keepdims=True)                   # (n_codes, 1)

    n_flat = x_.shape[0]
    tn = _pick_tile(n_flat, tile_n)
    num_tiles = n_flat // tn

    q, idx, cnt, sq = pl.pallas_call(
        _vq_kernel,
        out_shape=(
            jax.ShapeDtypeStruct((n_flat, dim), jnp.float32),
            jax.ShapeDtypeStruct((num_tiles, 1, tn), jnp.int32),
            jax.ShapeDtypeStruct((num_tiles, n_codes, 1), jnp.float32),
            jax.ShapeDtypeStruct((num_tiles, 1, 1), jnp.float32),
        ),
        grid_spec=pltpu.PrefetchScalarGridSpec(
            num_scalar_prefetch=0,
            grid=(num_tiles,),
            in_specs=[
                pl.BlockSpec((tn, dim), lambda i: (i, 0)),
                pl.BlockSpec((n_codes, dim), lambda i: (0, 0)),
                pl.BlockSpec((n_codes, 1), lambda i: (0, 0)),
            ],
            out_specs=[
                pl.BlockSpec((tn, dim), lambda i: (i, 0)),
                pl.BlockSpec((1, 1, tn), lambda i: (i, 0, 0)),
                pl.BlockSpec((1, n_codes, 1), lambda i: (i, 0, 0)),
                pl.BlockSpec((1, 1, 1), lambda i: (i, 0, 0)),
            ],
        ),
        compiler_params=pltpu.CompilerParams(
            dimension_semantics=("parallel",),
            vmem_limit_bytes=48 * 1024 * 1024,
        ),
    )(x_, emb, e2)

    quantize = q.reshape(-1, d_latent)                   # (tokens, d_latent)
    diff = jnp.sum(sq) / jnp.float32(n_flat * dim)       # == mean((q - x)**2)
    # straight-through estimator: forward value equals `quantize`
    z = x + lax.stop_gradient(quantize - x)
    codes = idx.reshape(-1).reshape(-1, n_groups)        # (tokens, n_groups)

    counts = jnp.sum(cnt, axis=(0, 2))                   # (n_codes,)
    avg_pr = counts / jnp.sum(counts)
    ppl = -jnp.sum(avg_pr * jnp.log(avg_pr + 1e-5))

    return dict(z=z, diff=diff, codes=codes, ppl=ppl)


def _reference_forward(x, embedding, n_groups):
    """Pure-JAX reference of the eval-mode PyTorch forward (sanity check)."""
    n_codes, dim = embedding.shape
    x_ = x.reshape(-1, dim)
    dist = (
        jnp.sum(x_**2, axis=1, keepdims=True)
        - 2.0 * x_ @ embedding.T
        + jnp.sum(embedding.T**2, axis=0, keepdims=True)
    )
    idx = jnp.argmax(-dist, axis=1)
    onehot = jax.nn.one_hot(idx, n_codes, dtype=x_.dtype)
    quantize = embedding[idx].reshape(-1, n_groups * dim)
    diff = jnp.mean((quantize - x) ** 2)
    z = quantize
    codes = idx.reshape(-1, n_groups)
    avg_pr = onehot.sum(0)
    avg_pr = avg_pr / avg_pr.sum()
    ppl = -jnp.sum(avg_pr * jnp.log(avg_pr + 1e-5))
    return dict(z=z, diff=diff, codes=codes, ppl=ppl)


if __name__ == "__main__":
    # Small config consistent with the PyTorch __init__ constraints.
    d_latent = 32
    n_groups = 4
    dim = d_latent // n_groups          # 8
    n_codes = 64
    n_tokens = 256                      # n_flat = 1024 -> 2 tiles of 512

    key = jax.random.PRNGKey(0)
    k_x, k_e = jax.random.split(key)
    x = jax.random.normal(k_x, (n_tokens, d_latent), dtype=jnp.float32)
    embedding = jax.random.normal(k_e, (n_codes, dim), dtype=jnp.float32)

    out = vector_quantize_ema_forward(x, embedding, n_groups=n_groups)
    out = jax.tree_util.tree_map(jax.block_until_ready, out)

    ref = _reference_forward(x, embedding, n_groups)
    assert out["z"].shape == (n_tokens, d_latent)
    assert out["codes"].shape == (n_tokens, n_groups)
    assert jnp.allclose(out["z"], ref["z"], atol=1e-5)
    assert jnp.all(out["codes"] == ref["codes"])
    assert jnp.allclose(out["diff"], ref["diff"], atol=1e-4)
    assert jnp.allclose(out["ppl"], ref["ppl"], atol=1e-5)

    print("KERNEL_OK")
</pallas_src>

<mosaic_0001>
module attributes {stable_mosaic.version = 11 : i64} {
  func.func @_vq_kernel(%arg0: i32, %arg1: memref<512x8xf32, #tpu.memory_space<vmem>>, %arg2: memref<64x8xf32, #tpu.memory_space<vmem>>, %arg3: memref<64x1xf32, #tpu.memory_space<vmem>>, %arg4: memref<512x8xf32, #tpu.memory_space<vmem>>, %arg5: memref<1x1x512xi32, #tpu.memory_space<vmem>>, %arg6: memref<1x64x1xf32, #tpu.memory_space<vmem>>, %arg7: memref<1x1x1xf32, #tpu.memory_space<vmem>>) attributes {dimension_semantics = [#tpu.dimension_semantics<parallel>], iteration_bounds = array<i64: 2>, scalar_prefetch = 0 : i64, scratch_operands = 0 : i64, tpu.core_type = #tpu.core_type<tc>, window_params = [{transform_indices = @transform_0, window_bounds = array<i64: 512, 8>}, {pipeline_mode = #tpu.pipeline_mode<synchronous>, transform_indices = @transform_1, window_bounds = array<i64: 64, 8>}, {pipeline_mode = #tpu.pipeline_mode<synchronous>, transform_indices = @transform_2, window_bounds = array<i64: 64, 1>}, {transform_indices = @transform_3, window_bounds = array<i64: 512, 8>}, {transform_indices = @transform_4, window_bounds = array<i64: 1, 1, 512>}, {transform_indices = @transform_5, window_bounds = array<i64: 1, 64, 1>}, {transform_indices = @transform_6, window_bounds = array<i64: 1, 1, 1>}]} {
    %c0 = arith.constant 0 : index
    %c0_0 = arith.constant 0 : index
    %0 = vector.load %arg1[%c0, %c0_0] : memref<512x8xf32, #tpu.memory_space<vmem>>, vector<512x8xf32>
    %c0_1 = arith.constant 0 : index
    %c0_2 = arith.constant 0 : index
    %1 = vector.load %arg2[%c0_1, %c0_2] : memref<64x8xf32, #tpu.memory_space<vmem>>, vector<64x8xf32>
    %cst = arith.constant dense<0.000000e+00> : vector<64x512xf32>
    %2 = tpu.matmul %1, %0, %cst {dimension_numbers = #tpu.dot_dimension_numbers<[1], [1], [0], [0], [0, 0, 1, 0], [], []>} : vector<64x8xf32>, vector<512x8xf32>, vector<64x512xf32> -> vector<64x512xf32>
    %c0_3 = arith.constant 0 : index
    %c0_4 = arith.constant 0 : index
    %3 = vector.load %arg3[%c0_3, %c0_4] : memref<64x1xf32, #tpu.memory_space<vmem>>, vector<64x1xf32>
    %cst_5 = arith.constant 2.000000e+00 : f32
    %4 = vector.broadcast %cst_5 : f32 to vector<64x512xf32>
    %5 = arith.mulf %4, %2 : vector<64x512xf32>
    %6 = vector.broadcast %3 : vector<64x1xf32> to vector<64x512xf32>
    %7 = arith.subf %6, %5 : vector<64x512xf32>
    %8 = tpu.iota {dimensions = array<i32: 0>} : vector<64x512xi32>
    %cst_6 = arith.constant dense<0x7F800000> : vector<512xf32>
    %9 = vector.multi_reduction <minimumf>, %7, %cst_6 [0] : vector<64x512xf32> to vector<512xf32>
    %10 = vector.shape_cast %9 : vector<512xf32> to vector<1x512xf32>
    %11 = vector.broadcast %10 : vector<1x512xf32> to vector<64x512xf32>
    %12 = arith.cmpf oeq, %7, %11 : vector<64x512xf32>
    %c64_i32 = arith.constant 64 : i32
    %13 = vector.broadcast %c64_i32 : i32 to vector<64x512xi32>
    %14 = arith.select %12, %8, %13 : vector<64x512xi1>, vector<64x512xi32>
    %cst_7 = arith.constant dense<2147483647> : vector<512xi32>
    %15 = vector.multi_reduction <minsi>, %14, %cst_7 [0] : vector<64x512xi32> to vector<512xi32>
    %16 = vector.shape_cast %15 : vector<512xi32> to vector<1x512xi32>
    %17 = vector.broadcast %16 : vector<1x512xi32> to vector<64x512xi32>
    %18 = arith.cmpi eq, %8, %17 : vector<64x512xi32>
    %19 = arith.extui %18 : vector<64x512xi1> to vector<64x512xi32>
    %20 = arith.sitofp %19 : vector<64x512xi32> to vector<64x512xf32>
    %cst_8 = arith.constant dense<0.000000e+00> : vector<512x8xf32>
    %21 = tpu.matmul %20, %1, %cst_8 {dimension_numbers = #tpu.dot_dimension_numbers<[0], [0], [1], [1], [0, 1, 1, 1], [], []>} : vector<64x512xf32>, vector<64x8xf32>, vector<512x8xf32> -> vector<512x8xf32>
    %c0_9 = arith.constant 0 : index
    %c0_10 = arith.constant 0 : index
    %22 = vector.load %arg4[%c0_9, %c0_10] : memref<512x8xf32, #tpu.memory_space<vmem>>, vector<512x8xf32>
    tpu.vector_store %arg4[%c0_9, %c0_10], %21 {strides = array<i32>} : memref<512x8xf32, #tpu.memory_space<vmem>>, vector<512x8xf32>,
    %23 = vector.shape_cast %16 : vector<1x512xi32> to vector<1x1x512xi32>
    %c0_11 = arith.constant 0 : index
    %c0_12 = arith.constant 0 : index
    %c0_13 = arith.constant 0 : index
    %24 = vector.load %arg5[%c0_11, %c0_12, %c0_13] : memref<1x1x512xi32, #tpu.memory_space<vmem>>, vector<1x1x512xi32>
    tpu.vector_store %arg5[%c0_11, %c0_12, %c0_13], %23 {strides = array<i32>} : memref<1x1x512xi32, #tpu.memory_space<vmem>>, vector<1x1x512xi32>,
    %cst_14 = arith.constant dense<0.000000e+00> : vector<64xf32>
    %25 = vector.multi_reduction <add>, %20, %cst_14 [1] : vector<64x512xf32> to vector<64xf32>
    %26 = vector.shape_cast %25 : vector<64xf32> to vector<64x1xf32>
    %27 = vector.shape_cast %26 : vector<64x1xf32> to vector<1x64x1xf32>
    %c0_15 = arith.constant 0 : index
    %c0_16 = arith.constant 0 : index
    %c0_17 = arith.constant 0 : index
    %28 = vector.load %arg6[%c0_15, %c0_16, %c0_17] : memref<1x64x1xf32, #tpu.memory_space<vmem>>, vector<1x64x1xf32>
    tpu.vector_store %arg6[%c0_15, %c0_16, %c0_17], %27 {strides = array<i32>} : memref<1x64x1xf32, #tpu.memory_space<vmem>>, vector<1x64x1xf32>,
    %29 = arith.subf %21, %0 : vector<512x8xf32>
    %30 = arith.mulf %29, %29 : vector<512x8xf32>
    %31 = vector.shape_cast %30 : vector<512x8xf32> to vector<1x512x8xf32>
    %cst_18 = arith.constant dense<0.000000e+00> : vector<1xf32>
    %32 = vector.multi_reduction <add>, %31, %cst_18 [1, 2] : vector<1x512x8xf32> to vector<1xf32>
    %33 = vector.shape_cast %32 : vector<1xf32> to vector<1x1x1xf32>
    %34 = vector.extract %33[0, 0, 0] : f32 from vector<1x1x1xf32>
    %35 = vector.broadcast %34 : f32 to vector<1x1xf32>
    %36 = vector.shape_cast %35 : vector<1x1xf32> to vector<1x1x1xf32>
    %c0_19 = arith.constant 0 : index
    %c0_20 = arith.constant 0 : index
    %c0_21 = arith.constant 0 : index
    %37 = vector.load %arg7[%c0_19, %c0_20, %c0_21] : memref<1x1x1xf32, #tpu.memory_space<vmem>>, vector<1x1x1xf32>
    tpu.vector_store %arg7[%c0_19, %c0_20, %c0_21], %36 {strides = array<i32>} : memref<1x1x1xf32, #tpu.memory_space<vmem>>, vector<1x1x1xf32>,
    return
  }
  func.func @transform_0(%arg0: i32) -> (i32, i32) {
    %c0_i32 = arith.constant 0 : i32
    %c0_i32_0 = arith.constant 0 : i32
    return %arg0, %c0_i32 : i32, i32
  }
  func.func @transform_1(%arg0: i32) -> (i32, i32) {
    %c0_i32 = arith.constant 0 : i32
    %c0_i32_0 = arith.constant 0 : i32
    %c0_i32_1 = arith.constant 0 : i32
    return %c0_i32, %c0_i32_0 : i32, i32
  }
  func.func @transform_2(%arg0: i32) -> (i32, i32) {
    %c0_i32 = arith.constant 0 : i32
    %c0_i32_0 = arith.constant 0 : i32
    %c0_i32_1 = arith.constant 0 : i32
    return %c0_i32, %c0_i32_0 : i32, i32
  }
  func.func @transform_3(%arg0: i32) -> (i32, i32) {
    %c0_i32 = arith.constant 0 : i32
    %c0_i32_0 = arith.constant 0 : i32
    return %arg0, %c0_i32 : i32, i32
  }
  func.func @transform_4(%arg0: i32) -> (i32, i32, i32) {
    %c0_i32 = arith.constant 0 : i32
    %c0_i32_0 = arith.constant 0 : i32
    %c0_i32_1 = arith.constant 0 : i32
    return %arg0, %c0_i32, %c0_i32_0 : i32, i32, i32
  }
  func.func @transform_5(%arg0: i32) -> (i32, i32, i32) {
    %c0_i32 = arith.constant 0 : i32
    %c0_i32_0 = arith.constant 0 : i32
    %c0_i32_1 = arith.constant 0 : i32
    return %arg0, %c0_i32, %c0_i32_0 : i32, i32, i32
  }
  func.func @transform_6(%arg0: i32) -> (i32, i32, i32) {
    %c0_i32 = arith.constant 0 : i32
    %c0_i32_0 = arith.constant 0 : i32
    %c0_i32_1 = arith.constant 0 : i32
    return %arg0, %c0_i32, %c0_i32_0 : i32, i32, i32
  }
}

</mosaic_0001>

<bundles_post_ra>
// kernel: vector_quantize_ema_forward.1
= control target key start
LH: loop header
LB: loop body
LE: loop exit
PB: predicated region body
PF: predicated region fallthrough
CT: control target
= control target key end

     0   :  { %s3194_s21 = smov 0   ;;  %s4307_s0 = inlined_call_operand.vmem [shape: f32[1024,8], index: 0, kind: input, shape index: {}]   ;;  %s4308_s1 = inlined_call_operand.vmem [shape: f32[64,8], index: 1, kind: input, shape index: {}]   ;;  %s4309_s2 = inlined_call_operand.vmem [shape: f32[64,1], index: 2, kind: input, shape index: {}]   ;;  %s4310_s3 = inlined_call_operand.vmem [shape: f32[1024,8], index: 3, kind: output, shape index: {0}]   ;;  %s4311_s4 = inlined_call_operand.vmem [shape: s32[2,1,512], index: 4, kind: output, shape index: {1}]   ;;  %s4312_s5 = inlined_call_operand.vmem [shape: f32[2,64,1], index: 5, kind: output, shape index: {2}]   ;;  %s4313_s6 = inlined_call_operand.vmem [shape: f32[2,1,1], index: 6, kind: output, shape index: {3}]  }
   0x1 LB: > { %s3200_s22 = sadd.s32 4294967295, %s3154_s21   ;;  %p2490_p0 = scmp.ge.s32.totalorder %s3154_s21, 1  ;;  %s3154_s21 = sphi %s3194_s21, %s17_s21  }
   0x2   : > { %p220_p1 = scmp.lt.s32.totalorder %s3154_s21, 3 }
   0x4   : > { %p221_p2 = pnand %p2490_p0, %p220_p1 }
   0x5   : > { %s2491_s23 = sshll.u32 (!%p221_p2), %s3200_s22, 6  ;;  %vm4314_vm0 = vcmask (!%p221_p2), 64512   ;;  %v3208_v0 = vld [vmem:[%s4308_s1] sm:$0xff] (!%p221_p2)  ;;  %v3156_v29 = vmov (!%p221_p2), 0   ;;  %v803_v31 = vld [vmem:[%s4309_s2 + $0x10] sm:$0xff] (!%p221_p2)  ;;  %v802_v32 = vld [vmem:[%s4309_s2 + $0x8] sm:$0xff] (!%p221_p2) }
   0x6   : > { %224 = sbr.rel (%p221_p2) target bundleno = 1086 (0x43e), region = 32  ;;  %p263_p3 = scmp.lt.s32.totalorder (!%p221_p2), %s2491_s23, 127  ;;  %2709 = vmatprep.mubr.msk.f32.mxu1 (!%p221_p2), %vm4314_vm0, %v3208_v0  ;;  %vm3224_vm1 = vmpackc.low (!%p221_p2), %vm4314_vm0, %vm4314_vm0  ;;  %v801_v27 = vld [vmem:[%s4309_s2] sm:$0xff] (!%p221_p2)  ;;  %3082 = vset.pattern.permute.xlu0 (!%p221_p2), %v3156_v29  ;;  %v804_v37 = vld [vmem:[%s4309_s2 + $0x18] sm:$0xff] (!%p221_p2) }
   0x7   : > { %3083 = vset.pattern.permute.xlu1 (!%p221_p2), %v3156_v29  ;;  %843 = vperm.xlu0 (!%p221_p2), %3082, %v801_v27   ;;  %v805_v38 = vld [vmem:[%s4309_s2 + $0x20] sm:$0xff] (!%p221_p2)  ;;  %v806_v41 = vld [vmem:[%s4309_s2 + $0x28] sm:$0xff] (!%p221_p2)  ;;  %v807_v42 = vld [vmem:[%s4309_s2 + $0x30] sm:$0xff] (!%p221_p2)  ;;  %p274_p4 = scmp.lt.s32.totalorder (!%p221_p2), %s3200_s22, 1 }
   0x8   : > { %853 = vperm.xlu1 (!%p221_p2), %3083, %v803_v31   ;;  %v808_v45 = vld [vmem:[%s4309_s2 + $0x38] sm:$0xff] (!%p221_p2) }
   0x9   : > { %v3405_v29 = vld [vmem:[%s4308_s1 + $0x38] sm:$0xff] (!%p221_p2) }
   0xb   : > { %848 = vperm.xlu0 (!%p221_p2), %3082, %v802_v32  }
   0xc   : > { %858 = vperm.xlu1 (!%p221_p2), %3083, %v804_v37  }
   0xd   : > { %s4439_s23 = smov (!%p263_p3, %s2491_s23), 127  ;;  %s4441_s22 = smov (!%p274_p4, %s3200_s22), 1 }
   0xe   : > { %s2492_s26 = sshll.u32 %s4439_s23, 3  ;;  %s2495_s17 = sshll.u32 %s4441_s22, 2 }
   0xf   : > { %s3220_s29 = scalar_lea.vmem %s4307_s0, %s2492_s26  ;;  %863 = vperm.xlu0 %3082, %v805_v38   ;;  %s277_s20 = scalar_lea.vmem %s4311_s4, %s2495_s17 }
  0x10   : > { %v302_v2 = vld [vmem:[%s3220_s29 + $0x80] sm:$0xff]  ;;  %v303_v3 = vld [vmem:[%s3220_s29 + $0x88] sm:$0xff]  ;;  %v304_v7 = vld [vmem:[%s3220_s29 + $0x90] sm:$0xff]  ;;  %868 = vperm.xlu1 %3083, %v806_v41   ;;  %s2676_s24 = sshll.u32 %s4441_s22, 6  ;;  %s4030_s8 = scalar_lea.vmem %s4310_s3, %s2492_s26 }
  0x11   : > { %v286_v4 = vld [vmem:[%s3220_s29] sm:$0xff]  ;;  %v2957_v5 = vpack.c.bf16 %v303_v3, %v302_v2  ;;  %v287_v6 = vld [vmem:[%s3220_s29 + $0x8] sm:$0xff]  ;;  %v305_v8 = vld [vmem:[%s3220_s29 + $0x98] sm:$0xff]  ;;  %s4015_s28 = scalar_lea.vmem %s4312_s5, %s2676_s24 }
  0x12   : > { %v2960_v9 = vpack.c.bf16 %v287_v6, %v286_v4  ;;  %v2963_v10 = vpack.c.bf16 %v305_v8, %v304_v7  ;;  %v288_v11 = vld [vmem:[%s3220_s29 + $0x10] sm:$0xff]  ;;  %v289_v12 = vld [vmem:[%s3220_s29 + $0x18] sm:$0xff]  ;;  %v306_v13 = vld [vmem:[%s3220_s29 + $0xa0] sm:$0xff] }
  0x13   : > { %2959 = vmatprep.subr.msk.bf16.mxu1 %vm3224_vm1, %v2957_v5  ;;  %v307_v14 = vld [vmem:[%s3220_s29 + $0xa8] sm:$0xff]  ;;  %v2966_v15 = vpack.c.bf16 %v289_v12, %v288_v11  ;;  %v290_v17 = vld [vmem:[%s3220_s29 + $0x20] sm:$0xff]  ;;  %v308_v19 = vld [vmem:[%s3220_s29 + $0xb0] sm:$0xff]  ;;  %873 = vperm.xlu0 %3082, %v807_v42  }
  0x14   : > { %2962 = vmatpush3.bf16.xpose.msk.msra.mxu1 %vm3224_vm1, %v2960_v9  ;;  %v2969_v16 = vpack.c.bf16 %v307_v14, %v306_v13  ;;  %v291_v18 = vld [vmem:[%s3220_s29 + $0x28] sm:$0xff]  ;;  %v309_v20 = vld [vmem:[%s3220_s29 + $0xb8] sm:$0xff]  ;;  %v292_v23 = vld [vmem:[%s3220_s29 + $0x30] sm:$0xff]  ;;  %878 = vperm.xlu1 %3083, %v808_v45  }
  0x15   : > { %2965 = vmatprep.subr.msk.bf16.mxu1 %vm3224_vm1, %v2963_v10  ;;  %v2972_v21 = vpack.c.bf16 %v291_v18, %v290_v17  ;;  %v2975_v22 = vpack.c.bf16 %v309_v20, %v308_v19  ;;  %v293_v24 = vld [vmem:[%s3220_s29 + $0x38] sm:$0xff]  ;;  %v310_v25 = vld [vmem:[%s3220_s29 + $0xc0] sm:$0xff]  ;;  %v311_v26 = vld [vmem:[%s3220_s29 + $0xc8] sm:$0xff] }
  0x16   : > { %v2978_v28 = vpack.c.bf16 %v293_v24, %v292_v23  ;;  %v2981_v30 = vpack.c.bf16 %v311_v26, %v310_v25  ;;  %v294_v33 = vld [vmem:[%s3220_s29 + $0x40] sm:$0xff]  ;;  %v295_v34 = vld [vmem:[%s3220_s29 + $0x48] sm:$0xff]  ;;  %v312_v35 = vld [vmem:[%s3220_s29 + $0xd0] sm:$0xff] }
  0x17   : > { %v313_v36 = vld [vmem:[%s3220_s29 + $0xd8] sm:$0xff]  ;;  %v2984_v39 = vpack.c.bf16 %v295_v34, %v294_v33  ;;  %v296_v43 = vld [vmem:[%s3220_s29 + $0x50] sm:$0xff]  ;;  %v314_v46 = vld [vmem:[%s3220_s29 + $0xe0] sm:$0xff] }
  0x18   : > { %v2987_v40 = vpack.c.bf16 %v313_v36, %v312_v35  ;;  %v297_v44 = vld [vmem:[%s3220_s29 + $0x58] sm:$0xff]  ;;  %v315_v47 = vld [vmem:[%s3220_s29 + $0xe8] sm:$0xff]  ;;  %v298_v50 = vld [vmem:[%s3220_s29 + $0x60] sm:$0xff] }
  0x19   : > { %v2990_v48 = vpack.c.bf16 %v297_v44, %v296_v43  ;;  %v2993_v49 = vpack.c.bf16 %v315_v47, %v314_v46  ;;  %v299_v51 = vld [vmem:[%s3220_s29 + $0x68] sm:$0xff]  ;;  %v316_v52 = vld [vmem:[%s3220_s29 + $0xf0] sm:$0xff]  ;;  %v317_v53 = vld [vmem:[%s3220_s29 + $0xf8] sm:$0xff] }
  0x1a   : > { %v2996_v54 = vpack.c.bf16 %v299_v51, %v298_v50  ;;  %v2999_v55 = vpack.c.bf16 %v317_v53, %v316_v52  ;;  %v300_v56 = vld [vmem:[%s3220_s29 + $0x70] sm:$0xff]  ;;  %v301_v57 = vld [vmem:[%s3220_s29 + $0x78] sm:$0xff]  ;;  %v334_v58 = vld [vmem:[%s3220_s29 + $0x180] sm:$0xff] }
  0x1b   : > { %v335_v59 = vld [vmem:[%s3220_s29 + $0x188] sm:$0xff]  ;;  %v3002_v60 = vpack.c.bf16 %v301_v57, %v300_v56  ;;  %v318_v62 = vld [vmem:[%s3220_s29 + $0x100] sm:$0xff]  ;;  %v336_v2 = vld [vmem:[%s3220_s29 + $0x190] sm:$0xff] }
  0x1c   : > { %2968 = vmatpush3.bf16.xpose.msk.msra.mxu1 %vm3224_vm1, %v2966_v15  ;;  %v3005_v61 = vpack.c.bf16 %v335_v59, %v334_v58  ;;  %v319_v63 = vld [vmem:[%s3220_s29 + $0x108] sm:$0xff]  ;;  %v337_v3 = vld [vmem:[%s3220_s29 + $0x198] sm:$0xff]  ;;  %v3338_v7 = vld [vmem:[%s4308_s1 + $0x10] sm:$0xff] }
  0x1d   : > { %2971 = vmatprep.subr.msk.bf16.mxu1 %vm3224_vm1, %v2969_v16  ;;  %v3008_v4 = vpack.c.bf16 %v319_v63, %v318_v62  ;;  %v3327_v5 = vld [vmem:[%s4308_s1 + $0x8] sm:$0xff]  ;;  %v3011_v6 = vpack.c.bf16 %v337_v3, %v336_v2  ;;  %v320_v8 = vld [vmem:[%s3220_s29 + $0x110] sm:$0xff]  ;;  %v321_v9 = vld [vmem:[%s3220_s29 + $0x118] sm:$0xff] }
  0x1e   : > { %v338_v10 = vld [vmem:[%s3220_s29 + $0x1a0] sm:$0xff]  ;;  %v339_v11 = vld [vmem:[%s3220_s29 + $0x1a8] sm:$0xff]  ;;  %v3014_v12 = vpack.c.bf16 %v321_v9, %v320_v8  ;;  %v3353_v13 = vld [vmem:[%s4308_s1 + $0x18] sm:$0xff] }
  0x1f   : > { %v3017_v14 = vpack.c.bf16 %v339_v11, %v338_v10  ;;  %v3364_v15 = vld [vmem:[%s4308_s1 + $0x20] sm:$0xff]  ;;  %v323_v17 = vld [vmem:[%s3220_s29 + $0x128] sm:$0xff]  ;;  %v340_v18 = vld [vmem:[%s3220_s29 + $0x1b0] sm:$0xff] }
  0x20   : > { %v322_v16 = vld [vmem:[%s3220_s29 + $0x120] sm:$0xff]  ;;  %v341_v19 = vld [vmem:[%s3220_s29 + $0x1b8] sm:$0xff]  ;;  %v3390_v23 = vld [vmem:[%s4308_s1 + $0x30] sm:$0xff] }
  0x21   : > { %v3020_v20 = vpack.c.bf16 %v323_v17, %v322_v16  ;;  %v324_v24 = vld [vmem:[%s3220_s29 + $0x130] sm:$0xff]  ;;  %v325_v25 = vld [vmem:[%s3220_s29 + $0x138] sm:$0xff]  ;;  %v342_v26 = vld [vmem:[%s3220_s29 + $0x1c0] sm:$0xff] }
  0x22   : > { %v343_v27 = vld [vmem:[%s3220_s29 + $0x1c8] sm:$0xff]  ;;  %v326_v31 = vld [vmem:[%s3220_s29 + $0x140] sm:$0xff]  ;;  %v344_v33 = vld [vmem:[%s3220_s29 + $0x1d0] sm:$0xff] }
  0x23   : > { %v327_v32 = vld [vmem:[%s3220_s29 + $0x148] sm:$0xff]  ;;  %v345_v34 = vld [vmem:[%s3220_s29 + $0x1d8] sm:$0xff]  ;;  %v328_v37 = vld [vmem:[%s3220_s29 + $0x150] sm:$0xff] }
  0x24   : > { %2974 = vmatpush3.bf16.xpose.msk.msra.mxu1 %vm3224_vm1, %v2972_v21  ;;  %v3379_v21 = vld [vmem:[%s4308_s1 + $0x28] sm:$0xff]  ;;  %v3032_v35 = vpack.c.bf16 %v327_v32, %v326_v31  ;;  %v3035_v36 = vpack.c.bf16 %v345_v34, %v344_v33  ;;  %v329_v38 = vld [vmem:[%s3220_s29 + $0x158] sm:$0xff]  ;;  %v330_v43 = vld [vmem:[%s3220_s29 + $0x160] sm:$0xff] }
  0x25   : > { %2977 = vmatprep.subr.msk.bf16.mxu1 %vm3224_vm1, %v2975_v22  ;;  %v3023_v22 = vpack.c.bf16 %v341_v19, %v340_v18  ;;  %v3038_v41 = vpack.c.bf16 %v329_v38, %v328_v37  ;;  %v331_v44 = vld [vmem:[%s3220_s29 + $0x168] sm:$0xff]  ;;  %v348_v45 = vld [vmem:[%s3220_s29 + $0x1f0] sm:$0xff]  ;;  %v349_v46 = vld [vmem:[%s3220_s29 + $0x1f8] sm:$0xff] }
  0x26   : > { %v3044_v47 = vpack.c.bf16 %v331_v44, %v330_v43  ;;  %v333_v50 = vld [vmem:[%s3220_s29 + $0x178] sm:$0xff] }
  0x2c   : > { %2980 = vmatpush3.bf16.xpose.msk.msra.mxu1 %vm3224_vm1, %v2978_v28  ;;  %v3026_v28 = vpack.c.bf16 %v325_v25, %v324_v24 }
  0x2d   : > { %2983 = vmatprep.subr.msk.bf16.mxu1 %vm3224_vm1, %v2981_v30  ;;  %v3029_v30 = vpack.c.bf16 %v343_v27, %v342_v26 }
  0x34   : > { %2986 = vmatpush3.bf16.xpose.msk.msra.mxu1 %vm3224_vm1, %v2984_v39  ;;  %v346_v39 = vld [vmem:[%s3220_s29 + $0x1e0] sm:$0xff] }
  0x35   : > { %2989 = vmatprep.subr.msk.bf16.mxu1 %vm3224_vm1, %v2987_v40  ;;  %v347_v40 = vld [vmem:[%s3220_s29 + $0x1e8] sm:$0xff] }
  0x36   : > { %v3041_v42 = vpack.c.bf16 %v347_v40, %v346_v39 }
  0x3c   : > { %2992 = vmatpush3.bf16.xpose.msk.msra.mxu1 %vm3224_vm1, %v2990_v48  ;;  %v3047_v48 = vpack.c.bf16 %v349_v46, %v348_v45 }
  0x3d   : > { %2995 = vmatprep.subr.msk.bf16.mxu1 %vm3224_vm1, %v2993_v49  ;;  %v332_v49 = vld [vmem:[%s3220_s29 + $0x170] sm:$0xff] }
  0x3e   : > { %v3050_v51 = vpack.c.bf16 %v333_v50, %v332_v49 }
  0x44   : > { %2998 = vmatpush3.bf16.xpose.msk.msra.mxu1 %vm3224_vm1, %v2996_v54 }
  0x45   : > { %3001 = vmatprep.subr.msk.bf16.mxu1 %vm3224_vm1, %v2999_v55 }
  0x4c   : > { %3004 = vmatpush3.bf16.xpose.msk.msra.mxu1 %vm3224_vm1, %v3002_v60 }
  0x4d   : > { %3007 = vmatprep.subr.msk.bf16.mxu1 %vm3224_vm1, %v3005_v61 }
  0x53   : > { %2710 = vmatmul.mubr.msk.f32.vlgmr.msra.gmra.mrb[0].mxu1 %vm4314_vm0, %v3208_v0 }
  0x54   : > { %3010 = vmatpush3.bf16.xpose.msk.msra.mxu1 %vm3224_vm1, %v3008_v4  ;;  %2711 = vmatprep.mubr.msk.f32.mxu1 %vm4314_vm0, %v3327_v5 }
  0x55   : > { %3013 = vmatprep.subr.msk.bf16.mxu1 %vm3224_vm1, %v3011_v6 }
  0x57   : > { %2712 = vmatmul.mubr.msk.f32.gmra.mrb[2].mxu1 %vm4314_vm0, %v3327_v5 }
  0x58   : > { %2713 = vmatprep.mubr.msk.f32.mxu1 %vm4314_vm0, %v3338_v7 }
  0x5b   : > { %2714 = vmatmul.mubr.msk.f32.gmra.mrb[4].mxu1 %vm4314_vm0, %v3338_v7 }
  0x5c   : > { %3016 = vmatpush3.bf16.xpose.msk.msra.mxu1 %vm3224_vm1, %v3014_v12  ;;  %2715 = vmatprep.mubr.msk.f32.mxu1 %vm4314_vm0, %v3353_v13 }
  0x5d   : > { %3019 = vmatprep.subr.msk.bf16.mxu1 %vm3224_vm1, %v3017_v14 }
  0x5f   : > { %2716 = vmatmul.mubr.msk.f32.gmra.mrb[6].mxu1 %vm4314_vm0, %v3353_v13 }
  0x60   : > { %2717 = vmatprep.mubr.msk.f32.mxu1 %vm4314_vm0, %v3364_v15 }
  0x63   : > { %2718 = vmatmul.mubr.msk.f32.gmra.mrb[8].mxu1 %vm4314_vm0, %v3364_v15 }
  0x64   : > { %3022 = vmatpush3.bf16.xpose.msk.msra.mxu1 %vm3224_vm1, %v3020_v20  ;;  %2719 = vmatprep.mubr.msk.f32.mxu1 %vm4314_vm0, %v3379_v21 }
  0x65   : > { %3025 = vmatprep.subr.msk.bf16.mxu1 %vm3224_vm1, %v3023_v22 }
  0x67   : > { %2720 = vmatmul.mubr.msk.f32.gmra.mrb[10].mxu1 %vm4314_vm0, %v3379_v21 }
  0x68   : > { %2721 = vmatprep.mubr.msk.f32.mxu1 %vm4314_vm0, %v3390_v23 }
  0x6b   : > { %2722 = vmatmul.mubr.msk.f32.gmra.mrb[12].mxu1 %vm4314_vm0, %v3390_v23 }
  0x6c   : > { %3028 = vmatpush3.bf16.xpose.msk.msra.mxu1 %vm3224_vm1, %v3026_v28  ;;  %2723 = vmatprep.mubr.msk.f32.mxu1 %vm4314_vm0, %v3405_v29 }
  0x6d   : > { %3031 = vmatprep.subr.msk.bf16.mxu1 %vm3224_vm1, %v3029_v30 }
  0x6f   : > { %2724 = vmatmul.mubr.msk.f32.gmra.mrb[14].mxu1 %vm4314_vm0, %v3405_v29 }
  0x70   : > { %2757 = vmatprep.mubr.msk.f32.mxu1 %vm4314_vm0, %v3208_v0 }
  0x74   : > { %3034 = vmatpush3.bf16.xpose.msk.msra.mxu1 %vm3224_vm1, %v3032_v35 }
  0x75   : > { %3037 = vmatprep.subr.msk.bf16.mxu1 %vm3224_vm1, %v3035_v36 }
  0x7c   : > { %3040 = vmatpush3.bf16.xpose.msk.msra.mxu1 %vm3224_vm1, %v3038_v41 }
  0x7d   : > { %3043 = vmatprep.subr.msk.bf16.mxu1 %vm3224_vm1, %v3041_v42 }
  0x84   : > { %3046 = vmatpush3.bf16.xpose.msk.msra.mxu1 %vm3224_vm1, %v3044_v47 }
  0x85   : > { %3049 = vmatprep.subr.msk.bf16.mxu1 %vm3224_vm1, %v3047_v48 }
  0x86   : > { %v3477_v1 = vpop.permute.xlu0 %843 }
  0x87   : > { %v3490_v2 = vpop.permute.xlu1 %853 }
  0x8a   : > { %v3479_v57 = vpop.permute.xlu0 %848 }
  0x8b   : > { %v3507_v22 = vpop.permute.xlu1 %858 }
  0x8c   : > { %3052 = vmatpush3.bf16.xpose.msk.msra.mxu1 %vm3224_vm1, %v3050_v51 }
  0x8e   : > { %v3516_v32 = vpop.permute.xlu0 %863 }
  0x8f   : > { %v3526_v41 = vpop.permute.xlu1 %868 }
  0x92   : > { %v3536_v50 = vpop.permute.xlu0 %873 }
  0x93   : > { %2758 = vmatmul.mubr.msk.f32.vlgmr.msra.gmra.mrb[16].mxu1 %vm4314_vm0, %v3208_v0 }
  0x94   : > { %2759 = vmatprep.mubr.msk.f32.mxu1 %vm4314_vm0, %v3327_v5 }
  0x97   : > { %2760 = vmatmul.mubr.msk.f32.gmra.mrb[18].mxu1 %vm4314_vm0, %v3327_v5 }
  0x98   : > { %2761 = vmatprep.mubr.msk.f32.mxu1 %vm4314_vm0, %v3338_v7 }
  0x9b   : > { %2762 = vmatmul.mubr.msk.f32.gmra.mrb[20].mxu1 %vm4314_vm0, %v3338_v7 }
  0x9c   : > { %2763 = vmatprep.mubr.msk.f32.mxu1 %vm4314_vm0, %v3353_v13 }
  0x9f   : > { %2764 = vmatmul.mubr.msk.f32.gmra.mrb[22].mxu1 %vm4314_vm0, %v3353_v13 }
  0xa0   : > { %2765 = vmatprep.mubr.msk.f32.mxu1 %vm4314_vm0, %v3364_v15 }
  0xa3   : > { %2766 = vmatmul.mubr.msk.f32.gmra.mrb[24].mxu1 %vm4314_vm0, %v3364_v15 }
  0xa4   : > { %2767 = vmatprep.mubr.msk.f32.mxu1 %vm4314_vm0, %v3379_v21 }
  0xa7   : > { %2768 = vmatmul.mubr.msk.f32.gmra.mrb[26].mxu1 %vm4314_vm0, %v3379_v21 }
  0xa8   : > { %2769 = vmatprep.mubr.msk.f32.mxu1 %vm4314_vm0, %v3390_v23 }
  0xab   : > { %2770 = vmatmul.mubr.msk.f32.gmra.mrb[28].mxu1 %vm4314_vm0, %v3390_v23 }
  0xac   : > { %2771 = vmatprep.mubr.msk.f32.mxu1 %vm4314_vm0, %v3405_v29 }
  0xaf   : > { %2772 = vmatmul.mubr.msk.f32.gmra.mrb[30].mxu1 %vm4314_vm0, %v3405_v29 }
 0x126   : > { %v641_v52 = vpop.f32.mrb[0].mxu1 }
 0x127   : > { %v643_v53 = vpop.f32.mrb[1].mxu1  ;;  %v809_v54 = vmul.f32 2.0, %v641_v52 }
 0x128   : > { %v810_v55 = vmul.f32 2.0, %v643_v53 }
 0x129   : > { %v3482_v61 = vsub.f32 %v3477_v1, %v809_v54 }
 0x12a   : > { %v647_v56 = vpop.f32.mrb[2].mxu1  ;;  %v3488_v63 = vsub.f32 %v3477_v1, %v810_v55 }
 0x12b   : > { %v813_v58 = vmul.f32 2.0, %v647_v56  ;;  %v649_v59 = vpop.f32.mrb[3].mxu1 }
 0x12c   : > { %v814_v60 = vmul.f32 2.0, %v649_v59 }
 0x12d   : > { %v3485_v62 = vsub.f32 %v3479_v57, %v813_v58 }
 0x12e   : > { %v3493_v3 = vsub.f32 %v3479_v57, %v814_v60  ;;  %v653_v4 = vpop.f32.mrb[4].mxu1  ;;  %v3546_v60 = vpop.permute.xlu1 %878 }
 0x12f   : > { %v817_v6 = vmul.f32 2.0, %v653_v4  ;;  %v922_v8 = vmin.f32 %v3482_v61, %v3485_v62  ;;  %v655_v9 = vpop.f32.mrb[5].mxu1 }
 0x130   : > { %v818_v10 = vmul.f32 2.0, %v655_v9  ;;  %v935_v11 = vmin.f32 %v3488_v63, %v3493_v3 }
 0x131   : > { %v3500_v12 = vsub.f32 %v3490_v2, %v817_v6 }
 0x132   : > { %v3503_v14 = vsub.f32 %v3490_v2, %v818_v10  ;;  %v659_v16 = vpop.f32.mrb[6].mxu1 }
 0x133   : > { %v923_v17 = vmin.f32 %v922_v8, %v3500_v12  ;;  %v821_v18 = vmul.f32 2.0, %v659_v16  ;;  %v661_v19 = vpop.f32.mrb[7].mxu1 }
 0x134   : > { %v936_v20 = vmin.f32 %v935_v11, %v3503_v14  ;;  %v822_v24 = vmul.f32 2.0, %v661_v19 }
 0x135   : > { %v3510_v25 = vsub.f32 %v3507_v22, %v821_v18  ;;  %v913_v18 = vlaneseq }
 0x136   : > { %v3513_v26 = vsub.f32 %v3507_v22, %v822_v24  ;;  %v665_v27 = vpop.f32.mrb[8].mxu1 }
 0x137   : > { %v924_v28 = vmin.f32 %v923_v17, %v3510_v25  ;;  %v825_v30 = vmul.f32 2.0, %v665_v27  ;;  %v667_v31 = vpop.f32.mrb[9].mxu1 }
 0x138   : > { %v937_v33 = vmin.f32 %v936_v20, %v3513_v26  ;;  %v826_v34 = vmul.f32 2.0, %v667_v31 }
 0x139   : > { %v3520_v35 = vsub.f32 %v3516_v32, %v825_v30 }
 0x13a   : > { %v3523_v36 = vsub.f32 %v3516_v32, %v826_v34  ;;  %v671_v37 = vpop.f32.mrb[10].mxu1 }
 0x13b   : > { %v925_v38 = vmin.f32 %v924_v28, %v3520_v35  ;;  %v829_v39 = vmul.f32 2.0, %v671_v37  ;;  %v673_v40 = vpop.f32.mrb[11].mxu1  ;;  %v3558_v28 = vshrl.u32 %v913_v18, 7 }
 0x13c   : > { %v938_v42 = vmin.f32 %v937_v33, %v3523_v36  ;;  %v830_v43 = vmul.f32 2.0, %v673_v40 }
 0x13d   : > { %v3530_v44 = vsub.f32 %v3526_v41, %v829_v39  ;;  %v3561_v37 = vadd.s32 8, %v3558_v28  ;;  %v3564_v39 = vadd.s32 16, %v3558_v28 }
 0x13e   : > { %v3533_v45 = vsub.f32 %v3526_v41, %v830_v43  ;;  %v677_v46 = vpop.f32.mrb[12].mxu1 }
 0x13f   : > { %v926_v47 = vmin.f32 %v925_v38, %v3530_v44  ;;  %v833_v48 = vmul.f32 2.0, %v677_v46  ;;  %v679_v49 = vpop.f32.mrb[13].mxu1 }
 0x140   : > { %v939_v51 = vmin.f32 %v938_v42, %v3533_v45  ;;  %v834_v52 = vmul.f32 2.0, %v679_v49 }
 0x141   : > { %v3540_v53 = vsub.f32 %v3536_v50, %v833_v48 }
 0x142   : > { %v3543_v54 = vsub.f32 %v3536_v50, %v834_v52  ;;  %v683_v55 = vpop.f32.mrb[14].mxu1 }
 0x143   : > { %v927_v56 = vmin.f32 %v926_v47, %v3540_v53  ;;  %v837_v58 = vmul.f32 2.0, %v683_v55  ;;  %v685_v59 = vpop.f32.mrb[15].mxu1 }
 0x144   : > { %v940_v4 = vmin.f32 %v939_v51, %v3543_v54  ;;  %v838_v6 = vmul.f32 2.0, %v685_v59  ;;  %v3610_v51 = vadd.s32 48, %v3558_v28  ;;  %v3057_v59 = vpack.c.bf16 %v3353_v13, %v3338_v7 }
 0x145   : > { %v3550_v8 = vsub.f32 %v3546_v60, %v837_v58 }
 0x146   : > { %v3553_v9 = vsub.f32 %v3546_v60, %v838_v6 }
 0x147   : > { %v928_v10 = vmin.f32 %v927_v56, %v3550_v8  ;;  %v3053_v56 = vpack.c.bf16 %v3327_v5, %v3208_v0 }
 0x148   : > { %v941_v11 = vmin.f32 %v940_v4, %v3553_v9  ;;  %v3624_v4 = vadd.s32 56, %v3558_v28 }
 0x149   : > { %v929_v16 = vrot.slane %v928_v10, 4  ;;  %3054 = vmatprep.subr.bf16.mxu0 %v3053_v56 }
 0x14a   : > { %v942_v17 = vrot.slane %v941_v11, 4  ;;  %3056 = vmatpush3.bf16.msra.mxu0 %v3053_v56 }
 0x14b   : > { %v930_v19 = vmin.f32 %v928_v10, %v929_v16  ;;  %3058 = vmatprep.subr.bf16.mxu0 %v3057_v59 }
 0x14c   : > { %v943_v20 = vmin.f32 %v941_v11, %v942_v17 }
 0x14d   : > { %v931_v24 = vrot.slane %v930_v19, 2 }
 0x14e   : > { %v944_v27 = vrot.slane %v943_v20, 2  ;;  %3060 = vmatpush3.bf16.msra.mxu0 %v3057_v59 }
 0x14f   : > { %v932_v30 = vmin.f32 %v930_v19, %v931_v24 }
 0x150   : > { %v945_v31 = vmin.f32 %v943_v20, %v944_v27 }
 0x151   : > { %v933_v33 = vrot.slane %v932_v30, 1 }
 0x152   : > { %v946_v34 = vrot.slane %v945_v31, 1 }
 0x153   : > { %v934_v38 = vmin.f32 %v932_v30, %v933_v33 }
 0x154   : > { %v3566_v40 = vmin.f32 %v945_v31, %v946_v34 }
 0x155   : > { %vm974_vm2 = vcmp.eq.f32.partialorder %v3482_v61, %v934_v38  ;;  %vm978_vm3 = vcmp.eq.f32.partialorder %v3485_v62, %v934_v38  ;;  %vm982_vm4 = vcmp.eq.f32.partialorder %v3500_v12, %v934_v38  ;;  %vm986_vm5 = vcmp.eq.f32.partialorder %v3510_v25, %v934_v38 }
 0x156   : > { %vm990_vm6 = vcmp.eq.f32.partialorder %v3520_v35, %v934_v38  ;;  %vm994_vm7 = vcmp.eq.f32.partialorder %v3530_v44, %v934_v38  ;;  %vm998_vm8 = vcmp.eq.f32.partialorder %v3540_v53, %v934_v38  ;;  %vm1002_vm9 = vcmp.eq.f32.partialorder %v3550_v8, %v934_v38 }
 0x157   : > { %v1006_v42 = vsel %vm974_vm2, %v3558_v28, 64  ;;  %v1010_v43 = vsel %vm978_vm3, %v3561_v37, 64  ;;  %v3579_v61 = vadd.s32 24, %v3558_v28  ;;  %v3582_v62 = vadd.s32 32, %v3558_v28 }
 0x158   : > { %v1014_v12 = vsel %vm982_vm4, %v3564_v39, 64  ;;  %vm1038_vm10 = vcmp.lt.s32.totalorder %v1006_v42, %v1010_v43  ;;  %vm975_vm11 = vcmp.eq.f32.partialorder %v3488_v63, %v3566_v40  ;;  %vm979_vm12 = vcmp.eq.f32.partialorder %v3493_v3, %v3566_v40 }
 0x159   : > { %vm983_vm13 = vcmp.eq.f32.partialorder %v3503_v14, %v3566_v40  ;;  %v1039_v46 = vsel %vm1038_vm10, %v1006_v42, %v1010_v43  ;;  %vm987_vm14 = vcmp.eq.f32.partialorder %v3513_v26, %v3566_v40  ;;  %vm991_vm15 = vcmp.eq.f32.partialorder %v3523_v36, %v3566_v40 }
 0x15a   : > { %vm995_vm1 = vcmp.eq.f32.partialorder %v3533_v45, %v3566_v40  ;;  %vm1040_vm2 = vcmp.lt.s32.totalorder %v1039_v46, %v1014_v12  ;;  %vm999_vm3 = vcmp.eq.f32.partialorder %v3543_v54, %v3566_v40  ;;  %vm1003_vm4 = vcmp.eq.f32.partialorder %v3553_v9, %v3566_v40 }
 0x15b   : > { %v1007_v63 = vsel %vm975_vm11, %v3558_v28, 64  ;;  %v3603_v3 = vadd.s32 40, %v3558_v28  ;;  %v1018_v47 = vsel %vm986_vm5, %v3579_v61, 64  ;;  %v1041_v48 = vsel %vm1040_vm2, %v1039_v46, %v1014_v12 }
 0x15c   : > { %v1011_v49 = vsel %vm979_vm12, %v3561_v37, 64  ;;  %vm1042_vm10 = vcmp.lt.s32.totalorder %v1041_v48, %v1018_v47  ;;  %v1022_v52 = vsel %vm990_vm6, %v3582_v62, 64  ;;  %v1015_v25 = vsel %vm983_vm13, %v3564_v39, 64 }
 0x15d   : > { %v1043_v55 = vsel %vm1042_vm10, %v1041_v48, %v1018_v47  ;;  %vm1061_vm11 = vcmp.lt.s32.totalorder %v1007_v63, %v1011_v49  ;;  %v1026_v35 = vsel %vm994_vm7, %v3603_v3, 64  ;;  %v1019_v0 = vsel %vm987_vm14, %v3579_v61, 64 }
 0x15e   : > { %vm1044_vm0 = vcmp.lt.s32.totalorder %v1043_v55, %v1022_v52  ;;  %v1062_v58 = vsel %vm1061_vm11, %v1007_v63, %v1011_v49  ;;  %v1030_v7 = vsel %vm998_vm8, %v3610_v51, 64  ;;  %v3061_v14 = vpack.c.bf16 %v3379_v21, %v3364_v15 }
 0x15f   : > { %v1045_v6 = vsel %vm1044_vm0, %v1043_v55, %v1022_v52  ;;  %vm1063_vm5 = vcmp.lt.s32.totalorder %v1062_v58, %v1015_v25  ;;  %v1023_v44 = vsel %vm991_vm15, %v3582_v62, 64  ;;  %v1034_v10 = vsel %vm1002_vm9, %v3624_v4, 64 }
 0x160   : > { %vm1046_vm6 = vcmp.lt.s32.totalorder %v1045_v6, %v1026_v35  ;;  %v1064_v5 = vsel %vm1063_vm5, %v1062_v58, %v1015_v25  ;;  %v1027_v53 = vsel %vm995_vm1, %v3603_v3, 64  ;;  %3062 = vmatprep.subr.bf16.mxu0 %v3061_v14  ;;  %v1031_v8 = vsel %vm999_vm3, %v3610_v51, 64 }
 0x161   : > { %v1047_v13 = vsel %vm1046_vm6, %v1045_v6, %v1026_v35  ;;  %vm1065_vm12 = vcmp.lt.s32.totalorder %v1064_v5, %v1019_v0  ;;  %v1035_v45 = vsel %vm1003_vm4, %v3624_v4, 64  ;;  %3064 = vmatpush3.bf16.msra.mxu0 %v3061_v14 }
 0x162   : > { %vm1048_vm0 = vcmp.lt.s32.totalorder %v1047_v13, %v1030_v7  ;;  %v1066_v26 = vsel %vm1065_vm12, %v1064_v5, %v1019_v0 }
 0x163   : > { %v1049_v11 = vsel %vm1048_vm0, %v1047_v13, %v1030_v7  ;;  %vm1067_vm7 = vcmp.lt.s32.totalorder %v1066_v26, %v1023_v44 }
 0x164   : > { %vm1050_vm8 = vcmp.lt.s32.totalorder %v1049_v11, %v1034_v10  ;;  %v1068_v15 = vsel %vm1067_vm7, %v1066_v26, %v1023_v44  ;;  %v3157_v26 = vmov 0.0  }
 0x165   : > { %v1051_v21 = vsel %vm1050_vm8, %v1049_v11, %v1034_v10  ;;  %vm1069_vm13 = vcmp.lt.s32.totalorder %v1068_v15, %v1027_v53 }
 0x166   : > { %v754_v16 = vpop.f32.mrb[16].mxu1  ;;  %v1052_v36 = vrot.slane %v1051_v21, 4  ;;  %v1070_v17 = vsel %vm1069_vm13, %v1068_v15, %v1027_v53 }
 0x167   : > { %v756_v19 = vpop.f32.mrb[17].mxu1  ;;  %vm1071_vm9 = vcmp.lt.s32.totalorder %v1070_v17, %v1031_v8  ;;  %v811_v24 = vmul.f32 2.0, %v754_v16 }
 0x168   : > { %vm1053_vm14 = vcmp.lt.s32.totalorder %v1051_v21, %v1052_v36  ;;  %v1072_v20 = vsel %vm1071_vm9, %v1070_v17, %v1031_v8  ;;  %v812_v30 = vmul.f32 2.0, %v756_v19 }
 0x169   : > { %v1054_v27 = vsel %vm1053_vm14, %v1051_v21, %v1052_v36  ;;  %vm1073_vm15 = vcmp.lt.s32.totalorder %v1072_v20, %v1035_v45  ;;  %v3658_v12 = vsub.f32 %v3477_v1, %v811_v24 }
 0x16a   : > { %v760_v31 = vpop.f32.mrb[18].mxu1  ;;  %v1055_v33 = vrot.slane %v1054_v27, 2  ;;  %v1074_v34 = vsel %vm1073_vm15, %v1072_v20, %v1035_v45  ;;  %v3664_v46 = vsub.f32 %v3477_v1, %v812_v30 }
 0x16b   : > { %v815_v54 = vmul.f32 2.0, %v760_v31  ;;  %v762_v38 = vpop.f32.mrb[19].mxu1  ;;  %v1075_v42 = vrot.slane %v1074_v34, 4 }
 0x16c   : > { %v816_v43 = vmul.f32 2.0, %v762_v38  ;;  %vm1056_vm1 = vcmp.lt.s32.totalorder %v1054_v27, %v1055_v33 }
 0x16d   : > { %v3661_v9 = vsub.f32 %v3479_v57, %v815_v54  ;;  %v1057_v40 = vsel %vm1056_vm1, %v1054_v27, %v1055_v33  ;;  %vm1076_vm2 = vcmp.lt.s32.totalorder %v1074_v34, %v1075_v42 }
 0x16e   : > { %v3667_v63 = vsub.f32 %v3479_v57, %v816_v43  ;;  %v766_v47 = vpop.f32.mrb[20].mxu1  ;;  %v1058_v48 = vrot.slane %v1057_v40, 1  ;;  %v1077_v49 = vsel %vm1076_vm2, %v1074_v34, %v1075_v42 }
 0x16f   : > { %v948_v52 = vmin.f32 %v3658_v12, %v3661_v9  ;;  %v819_v55 = vmul.f32 2.0, %v766_v47  ;;  %v768_v56 = vpop.f32.mrb[21].mxu1  ;;  %v1078_v25 = vrot.slane %v1077_v49, 2 }
 0x170   : > { %v961_v58 = vmin.f32 %v3664_v46, %v3667_v63  ;;  %v820_v59 = vmul.f32 2.0, %v768_v56  ;;  %vm1059_vm3 = vcmp.lt.s32.totalorder %v1057_v40, %v1058_v48 }
 0x171   : > { %v3674_v1 = vsub.f32 %v3490_v2, %v819_v55  ;;  %v3676_v35 = vsel %vm1059_vm3, %v1057_v40, %v1058_v48  ;;  %vm1079_vm4 = vcmp.lt.s32.totalorder %v1077_v49, %v1078_v25 }
 0x172   : > { %v3679_v57 = vsub.f32 %v3490_v2, %v820_v59  ;;  %v772_v6 = vpop.f32.mrb[22].mxu1  ;;  %v1080_v0 = vsel %vm1079_vm4, %v1077_v49, %v1078_v25  ;;  %vm1130_vm10 = vcmp.eq.s32.totalorder %v3558_v28, %v3676_v35  ;;  %vm1134_vm11 = vcmp.eq.s32.totalorder %v3561_v37, %v3676_v35 }
 0x173   : > { %v949_v5 = vmin.f32 %v948_v52, %v3674_v1  ;;  %v823_v7 = vmul.f32 2.0, %v772_v6  ;;  %v774_v13 = vpop.f32.mrb[23].mxu1  ;;  %v1081_v14 = vrot.slane %v1080_v0, 1  ;;  %v2578_v10 = vsel %vm1130_vm10, 1.0, %v3157_v26 }
 0x174   : > { %v962_v44 = vmin.f32 %v961_v58, %v3679_v57  ;;  %v824_v11 = vmul.f32 2.0, %v774_v13  ;;  %1226 = vxpose.xlu0.b32.start [1/8] (short) %v2578_v10, 128  ;;  %vm1138_vm5 = vcmp.eq.s32.totalorder %v3564_v39, %v3676_v35  ;;  %v2582_v21 = vsel %vm1134_vm11, 1.0, %v3157_v26 }
 0x175   : > { %v3687_v53 = vsub.f32 %v3507_v22, %v823_v7  ;;  %vm1082_vm6 = vcmp.lt.s32.totalorder %v1080_v0, %v1081_v14  ;;  %vm1142_vm12 = vcmp.eq.s32.totalorder %v3579_v61, %v3676_v35  ;;  %v2586_v19 = vsel %vm1138_vm5, 1.0, %v3157_v26 }
 0x176   : > { %v3694_v2 = vsub.f32 %v3507_v22, %v824_v11  ;;  %v778_v15 = vpop.f32.mrb[24].mxu1  ;;  %v3699_v16 = vsel %vm1082_vm6, %v1080_v0, %v1081_v14  ;;  %v2590_v54 = vsel %vm1142_vm12, 1.0, %v3157_v26  ;;  %vm1146_vm9 = vcmp.eq.s32.totalorder %v3582_v62, %v3676_v35 }
 0x177   : > { %v950_v36 = vmin.f32 %v949_v5, %v3687_v53  ;;  %v827_v8 = vmul.f32 2.0, %v778_v15  ;;  %v780_v17 = vpop.f32.mrb[25].mxu1  ;;  %v1996_v45 = vcombine.low %v3676_v35, %v3699_v16  ;;  %vm1131_vm0 = vcmp.eq.s32.totalorder %v3558_v28, %v3699_v16 }
 0x178   : > { %v963_v22 = vmin.f32 %v962_v44, %v3694_v2  ;;  %v828_v20 = vmul.f32 2.0, %v780_v17  ;;  %v2579_v24 = vsel %vm1131_vm0, 1.0, %v3157_v26  ;;  %1227 = vxpose.xlu0.b32.cont [2/8] (short) %v2582_v21, 128  ;;  %vm1135_vm7 = vcmp.eq.s32.totalorder %v3561_v37, %v3699_v16 }
 0x179   : > { %v3710_v27 = vsub.f32 %v3516_v32, %v827_v8  ;;  %vm1139_vm8 = vcmp.eq.s32.totalorder %v3564_v39, %v3699_v16  ;;  %1258 = vxpose.xlu1.b32.start [1/8] (short) %v2579_v24, 128  ;;  %v3716_v30 = vadd.f32 %v2579_v24, %v2578_v10  ;;  %v2583_v33 = vsel %vm1135_vm7, 1.0, %v3157_v26 }
 0x17a   : > { %v3719_v31 = vsub.f32 %v3516_v32, %v828_v20  ;;  %v784_v34 = vpop.f32.mrb[26].mxu1  ;;  %v3727_v42 = vadd.f32 %v2583_v33, %v2582_v21  ;;  %v2587_v47 = vsel %vm1139_vm8, 1.0, %v3157_v26  ;;  %vm1143_vm13 = vcmp.eq.s32.totalorder %v3579_v61, %v3699_v16 }
 0x17b   : > { %v951_v38 = vmin.f32 %v950_v36, %v3710_v27  ;;  %v831_v43 = vmul.f32 2.0, %v784_v34  ;;  %v786_v40 = vpop.f32.mrb[27].mxu1  ;;  %v3731_v49 = vadd.f32 %v2587_v47, %v2586_v19  ;;  %v2591_v55 = vsel %vm1143_vm13, 1.0, %v3157_v26 }
 0x17c   : > { %v964_v48 = vmin.f32 %v963_v22, %v3719_v31  ;;  %v832_v32 = vmul.f32 2.0, %v786_v40  ;;  %1228 = vxpose.xlu0.b32.cont [3/8] (short) %v2586_v19, 128  ;;  %vm1147_vm14 = vcmp.eq.s32.totalorder %v3582_v62, %v3699_v16  ;;  %v3746_v58 = vadd.f32 %v2591_v55, %v2590_v54 }
 0x17d   : > { %v3736_v52 = vsub.f32 %v3526_v41, %v831_v43  ;;  %1259 = vxpose.xlu1.b32.cont [2/8] (short) %v2583_v33, 128  ;;  %v2594_v59 = vsel %vm1146_vm9, 1.0, %v3157_v26  ;;  %v2595_v6 = vsel %vm1147_vm14, 1.0, %v3157_v26  ;;  %vm1150_vm15 = vcmp.eq.s32.totalorder %v3603_v3, %v3676_v35 }
 0x17e   : > { %v3744_v56 = vsub.f32 %v3526_v41, %v832_v32  ;;  %v790_v25 = vpop.f32.mrb[28].mxu1  ;;  %v3751_v13 = vadd.f32 %v2595_v6, %v2594_v59  ;;  %v2598_v44 = vsel %vm1150_vm15, 1.0, %v3157_v26  ;;  %vm1151_vm1 = vcmp.eq.s32.totalorder %v3603_v3, %v3699_v16 }
 0x17f   : > { %v952_v0 = vmin.f32 %v951_v38, %v3736_v52  ;;  %v835_v5 = vmul.f32 2.0, %v790_v25  ;;  %v792_v7 = vpop.f32.mrb[29].mxu1  ;;  %v2599_v11 = vsel %vm1151_vm1, 1.0, %v3157_v26  ;;  %vm1154_vm2 = vcmp.eq.s32.totalorder %v3610_v51, %v3676_v35 }
 0x180   : > { %v965_v14 = vmin.f32 %v964_v48, %v3744_v56  ;;  %v836_v41 = vmul.f32 2.0, %v792_v7  ;;  %1229 = vxpose.xlu0.b32.cont [4/8] (short) %v2590_v54, 128  ;;  %vm1155_vm3 = vcmp.eq.s32.totalorder %v3610_v51, %v3699_v16  ;;  %v3770_v36 = vadd.f32 %v2599_v11, %v2598_v44 }
 0x181   : > { %v3760_v10 = vsub.f32 %v3536_v50, %v835_v5  ;;  %1260 = vxpose.xlu1.b32.cont [3/8] (short) %v2587_v47, 128  ;;  %v2602_v8 = vsel %vm1154_vm2, 1.0, %v3157_v26  ;;  %v2603_v17 = vsel %vm1155_vm3, 1.0, %v3157_v26  ;;  %vm1158_vm4 = vcmp.eq.s32.totalorder %v3624_v4, %v3676_v35 }
 0x182   : > { %v3768_v15 = vsub.f32 %v3536_v50, %v836_v41  ;;  %v796_v21 = vpop.f32.mrb[30].mxu1  ;;  %v3775_v24 = vadd.f32 %v2603_v17, %v2602_v8  ;;  %v2606_v34 = vsel %vm1158_vm4, 1.0, %v3157_v26  ;;  %vm1159_vm10 = vcmp.eq.s32.totalorder %v3624_v4, %v3699_v16 }
 0x183   : > { %v953_v19 = vmin.f32 %v952_v0, %v3760_v10  ;;  %v839_v22 = vmul.f32 2.0, %v796_v21  ;;  %v798_v20 = vpop.f32.mrb[31].mxu1  ;;  %v2607_v38 = vsel %vm1159_vm10, 1.0, %v3157_v26  ;;  %v3065_v43 = vpack.c.bf16 %v3405_v29, %v3390_v23 }
 0x184   : > { %v966_v33 = vmin.f32 %v965_v14, %v3768_v15  ;;  %v840_v50 = vmul.f32 2.0, %v798_v20  ;;  %1230 = vxpose.xlu0.b32.cont [5/8] (short) %v2594_v59, 128  ;;  %v3792_v47 = vadd.f32 %v2607_v38, %v2606_v34 }
 0x185   : > { %v3784_v54 = vsub.f32 %v3546_v60, %v839_v22  ;;  %1261 = vxpose.xlu1.b32.cont [4/8] (short) %v2591_v55, 128  ;;  %3066 = vmatprep.subr.bf16.mxu0 %v3065_v43 }
 0x186   : > { %v3790_v40 = vsub.f32 %v3546_v60, %v840_v50  ;;  %3068 = vmatpush3.bf16.msra.mxu0 %v3065_v43 }
 0x187   : > { %v954_v48 = vmin.f32 %v953_v19, %v3784_v54 }
 0x188   : > { %v967_v32 = vmin.f32 %v966_v33, %v3790_v40  ;;  %1231 = vxpose.xlu0.b32.cont [6/8] (short) %v2598_v44, 128 }
 0x189   : > { %v955_v25 = vrot.slane %v954_v48, 4  ;;  %1262 = vxpose.xlu1.b32.cont [5/8] (short) %v2595_v6, 128 }
 0x18a   : > { %v968_v59 = vrot.slane %v967_v32, 4 }
 0x18b   : > { %v956_v0 = vmin.f32 %v954_v48, %v955_v25  ;;  %v3158_v48 = vmov 1966171168  }
 0x18c   : > { %v969_v5 = vmin.f32 %v967_v32, %v968_v59  ;;  %1232 = vxpose.xlu0.b32.cont [7/8] (short) %v2602_v8, 128  ;;  %v1999_v32 = vunpack.c.l.s4 %v3158_v48 }
 0x18d   : > { %v957_v7 = vrot.slane %v956_v0, 2  ;;  %1263 = vxpose.xlu1.b32.cont [6/8] (short) %v2599_v11, 128 }
 0x18e   : > { %v970_v23 = vrot.slane %v969_v5, 2 }
 0x18f   : > { %v958_v29 = vmin.f32 %v956_v0, %v957_v7 }
 0x190   : > { %v971_v60 = vmin.f32 %v969_v5, %v970_v23  ;;  %1233 = vxpose.xlu0.b32.end [8/8] (short) %v2606_v34, 128  ;;  %v2000_v5 = vunpack.c.0.s8 %v1999_v32 }
 0x191   : > { %v959_v55 = vrot.slane %v958_v29, 1  ;;  %1264 = vxpose.xlu1.b32.cont [7/8] (short) %v2603_v17, 128 }
 0x192   : > { %v972_v14 = vrot.slane %v971_v60, 1 }
 0x193   : > { %v960_v41 = vmin.f32 %v958_v29, %v959_v55  ;;  %v3867_v55 = vsub.s32 %v2000_v5, %v3558_v28 }
 0x194   : > { %v3796_v21 = vmin.f32 %v971_v60, %v972_v14 }
 0x195   : > { %vm976_vm11 = vcmp.eq.f32.partialorder %v3658_v12, %v960_v41  ;;  %vm980_vm5 = vcmp.eq.f32.partialorder %v3661_v9, %v960_v41  ;;  %vm984_vm6 = vcmp.eq.f32.partialorder %v3674_v1, %v960_v41  ;;  %vm988_vm12 = vcmp.eq.f32.partialorder %v3687_v53, %v960_v41  ;;  %1265 = vxpose.xlu1.b32.end [8/8] (short) %v2607_v38, 128 }
 0x196   : > { %vm992_vm0 = vcmp.eq.f32.partialorder %v3710_v27, %v960_v41  ;;  %vm996_vm7 = vcmp.eq.f32.partialorder %v3736_v52, %v960_v41  ;;  %vm1000_vm8 = vcmp.eq.f32.partialorder %v3760_v10, %v960_v41  ;;  %vm1004_vm13 = vcmp.eq.f32.partialorder %v3784_v54, %v960_v41 }
 0x197   : > { %v1008_v6 = vsel %vm976_vm11, %v3558_v28, 64  ;;  %v1012_v44 = vsel %vm980_vm5, %v3561_v37, 64  ;;  %v1016_v12 = vsel %vm984_vm6, %v3564_v39, 64  ;;  %vm977_vm14 = vcmp.eq.f32.partialorder %v3664_v46, %v3796_v21 }
 0x198   : > { %vm1084_vm9 = vcmp.lt.s32.totalorder %v1008_v6, %v1012_v44  ;;  %vm981_vm15 = vcmp.eq.f32.partialorder %v3667_v63, %v3796_v21  ;;  %vm985_vm1 = vcmp.eq.f32.partialorder %v3679_v57, %v3796_v21  ;;  %vm989_vm2 = vcmp.eq.f32.partialorder %v3694_v2, %v3796_v21 }
 0x199   : > { %v1085_v9 = vsel %vm1084_vm9, %v1008_v6, %v1012_v44  ;;  %vm993_vm3 = vcmp.eq.f32.partialorder %v3719_v31, %v3796_v21  ;;  %vm997_vm4 = vcmp.eq.f32.partialorder %v3744_v56, %v3796_v21  ;;  %vm1005_vm5 = vcmp.eq.f32.partialorder %v3790_v40, %v3796_v21 }
 0x19a   : > { %vm1086_vm10 = vcmp.lt.s32.totalorder %v1085_v9, %v1016_v12  ;;  %v1009_v46 = vsel %vm977_vm14, %v3558_v28, 64  ;;  %v1020_v63 = vsel %vm988_vm12, %v3579_v61, 64  ;;  %v1013_v11 = vsel %vm981_vm15, %v3561_v37, 64 }
 0x19b   : > { %v1087_v1 = vsel %vm1086_vm10, %v1085_v9, %v1016_v12  ;;  %v1024_v8 = vsel %vm992_vm0, %v3582_v62, 64  ;;  %vm1107_vm9 = vcmp.lt.s32.totalorder %v1009_v46, %v1013_v11  ;;  %v1017_v19 = vsel %vm985_vm1, %v3564_v39, 64 }
 0x19c   : > { %vm1088_vm6 = vcmp.lt.s32.totalorder %v1087_v1, %v1020_v63  ;;  %v1108_v22 = vsel %vm1107_vm9, %v1009_v46, %v1013_v11  ;;  %v1028_v53 = vsel %vm996_vm7, %v3603_v3, 64  ;;  %v1021_v27 = vsel %vm989_vm2, %v3579_v61, 64 }
 0x19d   : > { %v1089_v17 = vsel %vm1088_vm6, %v1087_v1, %v1020_v63  ;;  %vm1109_vm12 = vcmp.lt.s32.totalorder %v1108_v22, %v1017_v19  ;;  %v1032_v50 = vsel %vm1000_vm8, %v3610_v51, 64  ;;  %v1025_v52 = vsel %vm993_vm3, %v3582_v62, 64 }
 0x19e   : > { %vm1090_vm11 = vcmp.lt.s32.totalorder %v1089_v17, %v1024_v8  ;;  %v1110_v33 = vsel %vm1109_vm12, %v1108_v22, %v1017_v19  ;;  %v1036_v38 = vsel %vm1004_vm13, %v3624_v4, 64  ;;  %v1029_v10 = vsel %vm997_vm4, %v3603_v3, 64 }
 0x19f   : > { %v1091_v20 = vsel %vm1090_vm11, %v1089_v17, %v1024_v8  ;;  %vm1111_vm0 = vcmp.lt.s32.totalorder %v1110_v33, %v1021_v27  ;;  %vm4317_vm2 = vcmp.eq.f32.partialorder %v3768_v15, %v3796_v21  ;;  %v1037_v56 = vsel %vm1005_vm5, %v3624_v4, 64 }
 0x1a0   : > { %vm1092_vm14 = vcmp.lt.s32.totalorder %v1091_v20, %v1028_v53  ;;  %v1112_v34 = vsel %vm1111_vm0, %v1110_v33, %v1021_v27  ;;  %v1033_v54 = vsel %vm4317_vm2, %v3610_v51, 64  ;;  %v3873_v40 = vrot.slane %v1996_v45, %v3867_v55 }
 0x1a1   : > { %v1093_v57 = vsel %vm1092_vm14, %v1091_v20, %v1028_v53  ;;  %vm1113_vm7 = vcmp.lt.s32.totalorder %v1112_v34, %v1025_v52 }
 0x1a2   : > { %vm1094_vm15 = vcmp.lt.s32.totalorder %v1093_v57, %v1032_v50  ;;  %v1114_v43 = vsel %vm1113_vm7, %v1112_v34, %v1025_v52 }
 0x1a3   : > { %v1095_v2 = vsel %vm1094_vm15, %v1093_v57, %v1032_v50  ;;  %vm1115_vm8 = vcmp.lt.s32.totalorder %v1114_v43, %v1029_v10 }
 0x1a4   : > { %vm1096_vm1 = vcmp.lt.s32.totalorder %v1095_v2, %v1036_v38  ;;  %v1116_v59 = vsel %vm1115_vm8, %v1114_v43, %v1029_v10 }
 0x1a5   : > { %v1097_v25 = vsel %vm1096_vm1, %v1095_v2, %v1036_v38  ;;  %vm1117_vm13 = vcmp.lt.s32.totalorder %v1116_v59, %v1033_v54 }
 0x1a6   : > { %v1098_v31 = vrot.slane %v1097_v25, 4  ;;  %v1118_v0 = vsel %vm1117_vm13, %v1116_v59, %v1033_v54 }
 0x1a7   : > { %vm1119_vm4 = vcmp.lt.s32.totalorder %v1118_v0, %v1037_v56 }
 0x1a8   : > { %vm1099_vm3 = vcmp.lt.s32.totalorder %v1097_v25, %v1098_v31  ;;  %v1120_v29 = vsel %vm1119_vm4, %v1118_v0, %v1037_v56 }
 0x1a9   : > { %v1100_v7 = vsel %vm1099_vm3, %v1097_v25, %v1098_v31  ;;  %v1121_v60 = vrot.slane %v1120_v29, 4 }
 0x1aa   : > { %v1101_v23 = vrot.slane %v1100_v7, 2 }
 0x1ab   : > { %vm1122_vm11 = vcmp.lt.s32.totalorder %v1120_v29, %v1121_v60 }
 0x1ac   : > { %vm1102_vm10 = vcmp.lt.s32.totalorder %v1100_v7, %v1101_v23  ;;  %v1123_v41 = vsel %vm1122_vm11, %v1120_v29, %v1121_v60 }
 0x1ad   : > { %v1103_v15 = vsel %vm1102_vm10, %v1100_v7, %v1101_v23  ;;  %v1124_v6 = vrot.slane %v1123_v41, 2 }
 0x1ae   : > { %v1104_v14 = vrot.slane %v1103_v15, 1 }
 0x1af   : > { %vm1125_vm5 = vcmp.lt.s32.totalorder %v1123_v41, %v1124_v6 }
 0x1b0   : > { %vm1105_vm6 = vcmp.lt.s32.totalorder %v1103_v15, %v1104_v14  ;;  %v1126_v44 = vsel %vm1125_vm5, %v1123_v41, %v1124_v6 }
 0x1b1   : > { %v1106_v21 = vsel %vm1105_vm6, %v1103_v15, %v1104_v14  ;;  %v1127_v12 = vrot.slane %v1126_v44, 1 }
 0x1b2   : > { %vm1132_vm9 = vcmp.eq.s32.totalorder %v3558_v28, %v1106_v21  ;;  %vm1136_vm12 = vcmp.eq.s32.totalorder %v3561_v37, %v1106_v21  ;;  %vm1140_vm14 = vcmp.eq.s32.totalorder %v3564_v39, %v1106_v21  ;;  %vm1144_vm0 = vcmp.eq.s32.totalorder %v3579_v61, %v1106_v21 }
 0x1b3   : > { %v2580_v9 = vsel %vm1132_vm9, 1.0, %v3157_v26  ;;  %v2584_v46 = vsel %vm1136_vm12, 1.0, %v3157_v26  ;;  %v2588_v63 = vsel %vm1140_vm14, 1.0, %v3157_v26  ;;  %vm1148_vm15 = vcmp.eq.s32.totalorder %v3582_v62, %v1106_v21 }
 0x1b4   : > { %1290 = vxpose.xlu0.b32.start [1/8] (short) %v2580_v9, 128  ;;  %v2026_v35 = vadd.f32 %v2580_v9, %v3716_v30  ;;  %vm1152_vm7 = vcmp.eq.s32.totalorder %v3603_v3, %v1106_v21  ;;  %vm1128_vm1 = vcmp.lt.s32.totalorder %v1126_v44, %v1127_v12  ;;  %v2592_v16 = vsel %vm1144_vm0, 1.0, %v3157_v26 }
 0x1b5   : > { %v2596_v45 = vsel %vm1148_vm15, 1.0, %v3157_v26  ;;  %v2600_v1 = vsel %vm1152_vm7, 1.0, %v3157_v26  ;;  %v1129_v11 = vsel %vm1128_vm1, %v1126_v44, %v1127_v12  ;;  %vm1156_vm8 = vcmp.eq.s32.totalorder %v3610_v51, %v1106_v21 }
 0x1b6   : > { %vm1160_vm2 = vcmp.eq.s32.totalorder %v3624_v4, %v1106_v21  ;;  %v2041_v30 = vadd.f32 %v2592_v16, %v3746_v58  ;;  %v1997_v8 = vcombine.low %v1106_v21, %v1129_v11  ;;  %vm1133_vm13 = vcmp.eq.s32.totalorder %v3558_v28, %v1129_v11 }
 0x1b7   : > { %vm1137_vm3 = vcmp.eq.s32.totalorder %v3561_v37, %v1129_v11  ;;  %vm1141_vm4 = vcmp.eq.s32.totalorder %v3564_v39, %v1129_v11  ;;  %v2581_v17 = vsel %vm1133_vm13, 1.0, %v3157_v26  ;;  %vm1145_vm10 = vcmp.eq.s32.totalorder %v3579_v61, %v1129_v11 }
 0x1b8   : > { %1291 = vxpose.xlu0.b32.cont [2/8] (short) %v2584_v46, 128  ;;  %v2585_v19 = vsel %vm1137_vm3, 1.0, %v3157_v26  ;;  %v2589_v22 = vsel %vm1141_vm4, 1.0, %v3157_v26  ;;  %v2011_v58 = vrot.slane %v1997_v8, %v3867_v55  ;;  %1322 = vxpose.xlu1.b32.start [1/8] (short) %v2581_v17, 128  ;;  %v2593_v28 = vsel %vm1145_vm10, 1.0, %v3157_v26 }
 0x1b9   : > { %vm1149_vm11 = vcmp.eq.s32.totalorder %v3582_v62, %v1129_v11  ;;  %vm1153_vm6 = vcmp.eq.s32.totalorder %v3603_v3, %v1129_v11  ;;  %v2604_v53 = vsel %vm1156_vm8, 1.0, %v3157_v26  ;;  %vm1157_vm5 = vcmp.eq.s32.totalorder %v3610_v51, %v1129_v11 }
 0x1ba   : > { %v2597_v37 = vsel %vm1149_vm11, 1.0, %v3157_v26  ;;  %v2601_v39 = vsel %vm1153_vm6, 1.0, %v3157_v26  ;;  %v2605_v61 = vsel %vm1157_vm5, 1.0, %v3157_v26  ;;  %v2608_v20 = vsel %vm1160_vm2, 1.0, %v3157_v26 }
 0x1bb   : > { %vm1161_vm9 = vcmp.eq.s32.totalorder %v3624_v4, %v1129_v11  ;;  %v3919_v62 = vadd.f32 %v2581_v17, %v2026_v35  ;;  %v3923_v27 = vadd.f32 %v2593_v28, %v2041_v30  ;;  %v2051_v33 = vadd.f32 %v2600_v1, %v3770_v36 }
 0x1bc   : > { %1292 = vxpose.xlu0.b32.cont [3/8] (short) %v2588_v63, 128  ;;  %v2609_v3 = vsel %vm1161_vm9, 1.0, %v3157_v26  ;;  %v2061_v51 = vadd.f32 %v2608_v20, %v3792_v47  ;;  %1323 = vxpose.xlu1.b32.cont [2/8] (short) %v2585_v19, 128  ;;  %v2012_v50 = vcombine.low %v3873_v40, %v2011_v58  ;;  %v2031_v57 = vadd.f32 %v2584_v46, %v3727_v42 }
 0x1bd   : > { %v2036_v52 = vadd.f32 %v2588_v63, %v3731_v49  ;;  %v2046_v4 = vadd.f32 %v2596_v45, %v3751_v13  ;;  %v2052_v34 = vadd.f32 %v2601_v39, %v2051_v33  ;;  %vm2022_vm12 = vcmp.lt.s32.totalorder %v913_v18, 512 }
 0x1be   : > { %v2062_v38 = vadd.f32 %v2609_v3, %v2061_v51  ;;  %v2056_v26 = vadd.f32 %v2604_v53, %v3775_v24  ;;  %v2019_v36 = vrot.slane %v2012_v50, %v3867_v55  ;;  %v3937_v47 = vadd.f32 %v2585_v19, %v2031_v57 }
 0x1bf   : > { %v3939_v2 = vadd.f32 %v2589_v22, %v2036_v52  ;;  %v3941_v42 = vadd.f32 %v2597_v37, %v2046_v4  ;;  %vm1354_vm14 = vcmask 523264   ;;  %vm2065_vm0 = vcmask 7168  }
 0x1c0   : > { %1293 = vxpose.xlu0.b32.cont [4/8] (short) %v2592_v16, 128  ;;  %v3943_v49 = vadd.f32 %v2605_v61, %v2056_v26  ;;  %1324 = vxpose.xlu1.b32.cont [3/8] (short) %v2589_v22, 128  ;;  %2024 = vst.msk [vmem:[%s277_s20] sm:$0xf] %vm2022_vm12, %v2019_v36  ;;  %vm4318_vm15 = vcmask 64512  }
 0x1c1   : > { %vm4319_vm7 = vmmov %vm4318_vm15 }
 0x1c2   : > { %vm4320_vm1 = vmmov %vm4319_vm7 }
 0x1c3   : > { %vm4321_vm8 = vmmov %vm4320_vm1 }
 0x1c4   : > { %1294 = vxpose.xlu0.b32.cont [5/8] (short) %v2596_v45, 128  ;;  %1325 = vxpose.xlu1.b32.cont [4/8] (short) %v2593_v28, 128  ;;  %vm4322_vm2 = vmmov %vm4320_vm1 }
 0x1c5   : > { %vm4323_vm13 = vmmov %vm4320_vm1 }
 0x1c6   : > { %vm4324_vm3 = vmmov %vm4320_vm1 }
 0x1c7   : > { %vm4325_vm4 = vmmov %vm4320_vm1 }
 0x1c8   : > { %1295 = vxpose.xlu0.b32.cont [6/8] (short) %v2600_v1, 128  ;;  %1326 = vxpose.xlu1.b32.cont [5/8] (short) %v2597_v37, 128  ;;  %vm4326_vm10 = vmmov %vm4320_vm1 }
 0x1c9   : > { %vm4327_vm11 = vmmov %vm4320_vm1 }
 0x1ca   : > { %vm4328_vm6 = vmmov %vm4320_vm1 }
 0x1cb   : > { %vm4329_vm5 = vmmov %vm4320_vm1 }
 0x1cc   : > { %1296 = vxpose.xlu0.b32.cont [7/8] (short) %v2604_v53, 128  ;;  %1327 = vxpose.xlu1.b32.cont [6/8] (short) %v2601_v39, 128  ;;  %vm4330_vm9 = vmmov %vm4320_vm1 }
 0x1cd   : > { %vm4331_vm12 = vmmov %vm4320_vm1 }
 0x1d0   : > { %1297 = vxpose.xlu0.b32.end [8/8] (short) %v2608_v20, 128  ;;  %1328 = vxpose.xlu1.b32.cont [7/8] (short) %v2605_v61, 128 }
 0x1d4   : > { %1329 = vxpose.xlu1.b32.end [8/8] (short) %v2609_v3, 128 }
 0x1f4   : > { %v1242_v18 = vpop.trf.xlu0 }
 0x1f5   : > { %2861 = vmatprep.mubr.msk.f32.mxu0 %vm1354_vm14, %v1242_v18 }
 0x1f8   : > { %v1243_v13 = vpop.trf.xlu0 }
 0x1f9   : > { %2862 = vmatmul.mubr.msk.f32.vlgmr.msra.gmra.mrb[0].mxu0 %vm1354_vm14, %v1243_v13  ;;  %v1274_v24 = vpop.trf.xlu1 }
 0x1fc   : > { %v1244_v10 = vpop.trf.xlu0 }
 0x1fd   : > { %2864 = vmatprep.mubr.msk.f32.mxu0 %vm1354_vm14, %v1244_v10  ;;  %v1275_v43 = vpop.trf.xlu1 }
 0x200   : > { %v1245_v48 = vpop.trf.xlu0 }
 0x201   : > { %2865 = vmatmul.mubr.msk.f32.gmra.mrb[2].mxu0 %vm1354_vm14, %v1245_v48  ;;  %v1276_v32 = vpop.trf.xlu1 }
 0x204   : > { %v1246_v25 = vpop.trf.xlu0 }
 0x205   : > { %2867 = vmatprep.mubr.msk.f32.mxu0 %vm1354_vm14, %v1246_v25  ;;  %v1277_v31 = vpop.trf.xlu1 }
 0x208   : > { %v1247_v54 = vpop.trf.xlu0 }
 0x209   : > { %2868 = vmatmul.mubr.msk.f32.gmra.mrb[4].mxu0 %vm1354_vm14, %v1247_v54  ;;  %v1278_v59 = vpop.trf.xlu1  ;;  %v3084_v54 = vld [vmem:[%s3220_s29 + $0x8] sm:$0xff] }
 0x20c   : > { %v1248_v56 = vpop.trf.xlu0 }
 0x20d   : > { %2870 = vmatprep.mubr.msk.f32.mxu0 %vm1354_vm14, %v1248_v56  ;;  %v1279_v0 = vpop.trf.xlu1 }
 0x210   : > { %v1249_v5 = vpop.trf.xlu0 }
 0x211   : > { %2871 = vmatmul.mubr.msk.f32.gmra.mrb[6].mxu0 %vm1354_vm14, %v1249_v5  ;;  %v1280_v7 = vpop.trf.xlu1 }
 0x214   : > { %v1250_v23 = vpop.trf.xlu0 }
 0x215   : > { %2873 = vmatprep.mubr.msk.f32.mxu0 %vm1354_vm14, %v1250_v23  ;;  %v1281_v29 = vpop.trf.xlu1 }
 0x218   : > { %v1251_v60 = vpop.trf.xlu0 }
 0x219   : > { %2874 = vmatmul.mubr.msk.f32.gmra.mrb[8].mxu0 %vm1354_vm14, %v1251_v60  ;;  %v1282_v55 = vpop.trf.xlu1 }
 0x21b   : > { %2028 = vadd.xlane.f32.xlu1 %v3919_v62 }
 0x21c   : > { %v1252_v15 = vpop.trf.xlu0 }
 0x21d   : > { %2876 = vmatprep.mubr.msk.f32.mxu0 %vm1354_vm14, %v1252_v15  ;;  %v1283_v14 = vpop.trf.xlu1 }
 0x21f   : > { %2043 = vadd.xlane.f32.xlu1 %v3923_v27 }
 0x220   : > { %v1253_v41 = vpop.trf.xlu0 }
 0x221   : > { %2877 = vmatmul.mubr.msk.f32.gmra.mrb[10].mxu0 %vm1354_vm14, %v1253_v41  ;;  %v1284_v6 = vpop.trf.xlu1 }
 0x223   : > { %2053 = vadd.xlane.f32.xlu1 %v2052_v34 }
 0x224   : > { %v1254_v40 = vpop.trf.xlu0 }
 0x225   : > { %2879 = vmatprep.mubr.msk.f32.mxu0 %vm1354_vm14, %v1254_v40  ;;  %v1285_v21 = vpop.trf.xlu1  ;;  %v3087_v40 = vld [vmem:[%s3220_s29 + $0x10] sm:$0xff] }
 0x227   : > { %2063 = vadd.xlane.f32.xlu1 %v2062_v38 }
 0x228   : > { %v1255_v44 = vpop.trf.xlu0 }
 0x229   : > { %2880 = vmatmul.mubr.msk.f32.gmra.mrb[12].mxu0 %vm1354_vm14, %v1255_v44  ;;  %v1286_v12 = vpop.trf.xlu1 }
 0x22c   : > { %v1256_v9 = vpop.trf.xlu0 }
 0x22d   : > { %2882 = vmatprep.mubr.msk.f32.mxu0 %vm1354_vm14, %v1256_v9  ;;  %v1287_v46 = vpop.trf.xlu1 }
 0x230   : > { %v1257_v63 = vpop.trf.xlu0 }
 0x231   : > { %2883 = vmatmul.mubr.msk.f32.gmra.mrb[14].mxu0 %vm1354_vm14, %v1257_v63  ;;  %v1288_v35 = vpop.trf.xlu1 }
 0x232   : > { %2885 = vmatprep.mubr.msk.f32.mxu0 %vm1354_vm14, %v1274_v24 }
 0x234   : > { %v1306_v16 = vpop.trf.xlu0 }
 0x235   : > { %2886 = vmatmul.mubr.msk.f32.gmra.mrb[16].mxu0 %vm1354_vm14, %v1275_v43  ;;  %v1289_v45 = vpop.trf.xlu1 }
 0x236   : > { %2888 = vmatprep.mubr.msk.f32.mxu0 %vm1354_vm14, %v1276_v32 }
 0x238   : > { %v1307_v1 = vpop.trf.xlu0 }
 0x239   : > { %2889 = vmatmul.mubr.msk.f32.gmra.mrb[18].mxu0 %vm1354_vm14, %v1277_v31  ;;  %v1338_v11 = vpop.trf.xlu1 }
 0x23a   : > { %2891 = vmatprep.mubr.msk.f32.mxu0 %vm1354_vm14, %v1278_v59 }
 0x23c   : > { %v1308_v30 = vpop.trf.xlu0 }
 0x23d   : > { %2892 = vmatmul.mubr.msk.f32.gmra.mrb[20].mxu0 %vm1354_vm14, %v1279_v0  ;;  %v1339_v8 = vpop.trf.xlu1  ;;  %v3085_v0 = vld [vmem:[%s3220_s29] sm:$0xff] }
 0x23e   : > { %2894 = vmatprep.mubr.msk.f32.mxu0 %vm1354_vm14, %v1280_v7 }
 0x240   : > { %v1309_v17 = vpop.trf.xlu0 }
 0x241   : > { %2895 = vmatmul.mubr.msk.f32.gmra.mrb[22].mxu0 %vm1354_vm14, %v1281_v29  ;;  %v1340_v19 = vpop.trf.xlu1 }
 0x242   : > { %2897 = vmatprep.mubr.msk.f32.mxu0 %vm1354_vm14, %v1282_v55 }
 0x244   : > { %v1310_v22 = vpop.trf.xlu0 }
 0x245   : > { %2898 = vmatmul.mubr.msk.f32.gmra.mrb[24].mxu0 %vm1354_vm14, %v1283_v14  ;;  %v1341_v58 = vpop.trf.xlu1  ;;  %v3086_v14 = vld [vmem:[%s3220_s29 + $0x18] sm:$0xff] }
 0x246   : > { %2900 = vmatprep.mubr.msk.f32.mxu0 %vm1354_vm14, %v1284_v6 }
 0x248   : > { %v1311_v28 = vpop.trf.xlu0 }
 0x249   : > { %2901 = vmatmul.mubr.msk.f32.gmra.mrb[26].mxu0 %vm1354_vm14, %v1285_v21  ;;  %v1342_v39 = vpop.trf.xlu1 }
 0x24a   : > { %2903 = vmatprep.mubr.msk.f32.mxu0 %vm1354_vm14, %v1286_v12 }
 0x24c   : > { %v1312_v37 = vpop.trf.xlu0 }
 0x24d   : > { %2904 = vmatmul.mubr.msk.f32.gmra.mrb[28].mxu0 %vm1354_vm14, %v1287_v46  ;;  %v1343_v61 = vpop.trf.xlu1 }
 0x24e   : > { %2906 = vmatprep.mubr.msk.f32.mxu0 %vm1354_vm14, %v1288_v35 }
 0x250   : > { %v1313_v53 = vpop.trf.xlu0 }
 0x251   : > { %2907 = vmatmul.mubr.msk.f32.gmra.mrb[30].mxu0 %vm1354_vm14, %v1289_v45  ;;  %v1344_v3 = vpop.trf.xlu1 }
 0x252   : > { %2909 = vmatprep.mubr.msk.f32.mxu0 %vm1354_vm14, %v1306_v16  ;;  %v3088_v16 = vld [vmem:[%s3220_s29 + $0x28] sm:$0xff] }
 0x254   : > { %v1314_v20 = vpop.trf.xlu0 }
 0x255   : > { %2910 = vmatmul.mubr.msk.f32.gmra.mrb[32].mxu0 %vm1354_vm14, %v1307_v1  ;;  %v1345_v33 = vpop.trf.xlu1 }
 0x256   : > { %2912 = vmatprep.mubr.msk.f32.mxu0 %vm1354_vm14, %v1308_v30  ;;  %v3089_v30 = vld [vmem:[%s3220_s29 + $0x20] sm:$0xff] }
 0x258   : > { %v1315_v62 = vpop.trf.xlu0 }
 0x259   : > { %2913 = vmatmul.mubr.msk.f32.gmra.mrb[34].mxu0 %vm1354_vm14, %v1309_v17  ;;  %v1346_v57 = vpop.trf.xlu1 }
 0x25a   : > { %2915 = vmatprep.mubr.msk.f32.mxu0 %vm1354_vm14, %v1310_v22 }
 0x25c   : > { %v1316_v27 = vpop.trf.xlu0 }
 0x25d   : > { %2916 = vmatmul.mubr.msk.f32.gmra.mrb[36].mxu0 %vm1354_vm14, %v1311_v28  ;;  %v1347_v4 = vpop.trf.xlu1 }
 0x25e   : > { %2918 = vmatprep.mubr.msk.f32.mxu0 %vm1354_vm14, %v1312_v37 }
 0x260   : > { %v1317_v51 = vpop.trf.xlu0 }
 0x261   : > { %2919 = vmatmul.mubr.msk.f32.gmra.mrb[38].mxu0 %vm1354_vm14, %v1313_v53  ;;  %v1348_v26 = vpop.trf.xlu1 }
 0x262   : > { %2921 = vmatprep.mubr.msk.f32.mxu0 %vm1354_vm14, %v1314_v20 }
 0x264   : > { %v1318_v50 = vpop.trf.xlu0 }
 0x265   : > { %2922 = vmatmul.mubr.msk.f32.gmra.mrb[40].mxu0 %vm1354_vm14, %v1315_v62  ;;  %v1349_v36 = vpop.trf.xlu1  ;;  %v3091_v62 = vld [vmem:[%s3220_s29 + $0x30] sm:$0xff] }
 0x266   : > { %2924 = vmatprep.mubr.msk.f32.mxu0 %vm1354_vm14, %v1316_v27 }
 0x268   : > { %v1319_v52 = vpop.trf.xlu0 }
 0x269   : > { %2925 = vmatmul.mubr.msk.f32.gmra.mrb[42].mxu0 %vm1354_vm14, %v1317_v51  ;;  %v1350_v18 = vpop.trf.xlu1 }
 0x26a   : > { %2927 = vmatprep.mubr.msk.f32.mxu0 %vm1354_vm14, %v1318_v50 }
 0x26c   : > { %v1320_v34 = vpop.trf.xlu0 }
 0x26d   : > { %2928 = vmatmul.mubr.msk.f32.gmra.mrb[44].mxu0 %vm1354_vm14, %v1319_v52  ;;  %v1351_v13 = vpop.trf.xlu1 }
 0x26e   : > { %2930 = vmatprep.mubr.msk.f32.mxu0 %vm1354_vm14, %v1320_v34 }
 0x270   : > { %v1321_v38 = vpop.trf.xlu0 }
 0x271   : > { %2931 = vmatmul.mubr.msk.f32.gmra.mrb[46].mxu0 %vm1354_vm14, %v1321_v38  ;;  %v1352_v24 = vpop.trf.xlu1 }
 0x272   : > { %2933 = vmatprep.mubr.msk.f32.mxu0 %vm1354_vm14, %v1338_v11 }
 0x275   : > { %2934 = vmatmul.mubr.msk.f32.gmra.mrb[48].mxu0 %vm1354_vm14, %v1339_v8  ;;  %v1353_v10 = vpop.trf.xlu1 }
 0x276   : > { %2936 = vmatprep.mubr.msk.f32.mxu0 %vm1354_vm14, %v1340_v19 }
 0x279   : > { %2937 = vmatmul.mubr.msk.f32.gmra.mrb[50].mxu0 %vm1354_vm14, %v1341_v58 }
 0x27a   : > { %2939 = vmatprep.mubr.msk.f32.mxu0 %vm1354_vm14, %v1342_v39  ;;  %v3090_v39 = vld [vmem:[%s3220_s29 + $0x38] sm:$0xff] }
 0x27d   : > { %2940 = vmatmul.mubr.msk.f32.gmra.mrb[52].mxu0 %vm1354_vm14, %v1343_v61 }
 0x27e   : > { %2942 = vmatprep.mubr.msk.f32.mxu0 %vm1354_vm14, %v1344_v3 }
 0x281   : > { %2943 = vmatmul.mubr.msk.f32.gmra.mrb[54].mxu0 %vm1354_vm14, %v1345_v33 }
 0x282   : > { %2945 = vmatprep.mubr.msk.f32.mxu0 %vm1354_vm14, %v1346_v57 }
 0x285   : > { %2946 = vmatmul.mubr.msk.f32.gmra.mrb[56].mxu0 %vm1354_vm14, %v1347_v4  ;;  %v3092_v4 = vld [vmem:[%s3220_s29 + $0x48] sm:$0xff] }
 0x286   : > { %2948 = vmatprep.mubr.msk.f32.mxu0 %vm1354_vm14, %v1348_v26 }
 0x289   : > { %2949 = vmatmul.mubr.msk.f32.gmra.mrb[58].mxu0 %vm1354_vm14, %v1349_v36  ;;  %v3093_v36 = vld [vmem:[%s3220_s29 + $0x40] sm:$0xff] }
 0x28a   : > { %2951 = vmatprep.mubr.msk.f32.mxu0 %vm1354_vm14, %v1350_v18 }
 0x28d   : > { %2952 = vmatmul.mubr.msk.f32.gmra.mrb[60].mxu0 %vm1354_vm14, %v1351_v13 }
 0x28e   : > { %2954 = vmatprep.mubr.msk.f32.mxu0 %vm1354_vm14, %v1352_v24 }
 0x291   : > { %2955 = vmatmul.mubr.msk.f32.gmra.mrb[62].mxu0 %vm1354_vm14, %v1353_v10  ;;  %vm4332_vm14 = vmmov %vm4320_vm1 }
 0x2a8   : > { %v2029_v43 = vpop.xlane.xlu1 %2028 }
 0x2a9   : > { %2066 = vst.msk [vmem:[%s4015_s28] sm:$0xff] %vm2065_vm0, %v2029_v43 }
 0x2ac   : > { %v2044_v48 = vpop.xlane.xlu1 %2043 }
 0x2ad   : > { %2069 = vst.msk [vmem:[%s4015_s28 + $0x18] sm:$0xff] %vm2065_vm0, %v2044_v48 }
 0x2b0   : > { %v2054_v32 = vpop.xlane.xlu1 %2053 }
 0x2b1   : > { %2071 = vst.msk [vmem:[%s4015_s28 + $0x28] sm:$0xff] %vm2065_vm0, %v2054_v32 }
 0x2b4   : > { %v2064_v25 = vpop.xlane.xlu1 %2063 }
 0x2b5   : > { %2073 = vst.msk [vmem:[%s4015_s28 + $0x38] sm:$0xff] %vm2065_vm0, %v2064_v25  ;;  %v3094_v25 = vld [vmem:[%s3220_s29 + $0x58] sm:$0xff] }
 0x2cc   : > { %v2863_v31 = vpop.f32.mrb[0].mxu0 }
 0x2cd   : > { %1933 = vst.msk [vmem:[%s4030_s8 + $0x8] sm:$0xff] %vm4318_vm15, %v2863_v31  ;;  %v2075_v59 = vsub.f32 %v2863_v31, %v3084_v54  ;;  %v1613_v56 = vpop.f32.mrb[1].mxu0  ;;  %vm4333_vm15 = vmmov %vm4320_vm1 }
 0x2ce   : > { %1932 = vst.msk [vmem:[%s4030_s8] sm:$0xff] %vm4319_vm7, %v1613_v56  ;;  %v2074_v5 = vsub.f32 %v1613_v56, %v3085_v0  ;;  %vm4334_vm7 = vmmov %vm4320_vm1  ;;  %v3095_v56 = vld [vmem:[%s3220_s29 + $0x50] sm:$0xff] }
 0x2cf   : > { %v2139_v7 = vmul.f32 %v2075_v59, %v2075_v59 }
 0x2d0   : > { %v2138_v23 = vmul.f32 %v2074_v5, %v2074_v5 }
 0x2d1   : > { %v2203_v29 = vsel %vm4320_vm1, %v2139_v7, 0.0 }
 0x2d2   : > { %v2202_v60 = vsel %vm4321_vm8, %v2138_v23, 0.0  ;;  %vm4335_vm8 = vmmov %vm4320_vm1 }
 0x2d3   : > { %v2204_v55 = vadd.f32 %v2203_v29, %v2202_v60 }
 0x2d4   : > { %v2866_v15 = vpop.f32.mrb[2].mxu0 }
 0x2d5   : > { %1935 = vst.msk [vmem:[%s4030_s8 + $0x18] sm:$0xff] %vm4322_vm2, %v2866_v15  ;;  %v2077_v41 = vsub.f32 %v2866_v15, %v3086_v14  ;;  %v1623_v6 = vpop.f32.mrb[3].mxu0  ;;  %vm4336_vm2 = vmmov %vm4320_vm1  ;;  %v3096_v15 = vld [vmem:[%s3220_s29 + $0x68] sm:$0xff] }
 0x2d6   : > { %1934 = vst.msk [vmem:[%s4030_s8 + $0x10] sm:$0xff] %vm4323_vm13, %v1623_v6  ;;  %v2076_v21 = vsub.f32 %v1623_v6, %v3087_v40  ;;  %vm4337_vm13 = vmmov %vm4320_vm1  ;;  %v3097_v40 = vld [vmem:[%s3220_s29 + $0x60] sm:$0xff] }
 0x2d7   : > { %v2141_v44 = vmul.f32 %v2077_v41, %v2077_v41 }
 0x2d8   : > { %v2140_v12 = vmul.f32 %v2076_v21, %v2076_v21 }
 0x2d9   : > { %v2207_v63 = vsel %vm4325_vm4, %v2141_v44, 0.0  ;;  %vm4339_vm4 = vmmov %vm4320_vm1 }
 0x2da   : > { %v2205_v9 = vsel %vm4324_vm3, %v2140_v12, 0.0  ;;  %vm4338_vm3 = vmmov %vm4320_vm1 }
 0x2db   : > { %v2206_v46 = vadd.f32 %v2205_v9, %v2204_v55 }
 0x2dc   : > { %v2869_v35 = vpop.f32.mrb[4].mxu0 }
 0x2dd   : > { %1937 = vst.msk [vmem:[%s4030_s8 + $0x28] sm:$0xff] %vm4326_vm10, %v2869_v35  ;;  %v2079_v45 = vsub.f32 %v2869_v35, %v3088_v16  ;;  %v1633_v1 = vpop.f32.mrb[5].mxu0  ;;  %v2208_v11 = vadd.f32 %v2207_v63, %v2206_v46  ;;  %vm4340_vm10 = vmmov %vm4320_vm1  ;;  %v3098_v16 = vld [vmem:[%s3220_s29 + $0x78] sm:$0xff] }
 0x2de   : > { %1936 = vst.msk [vmem:[%s4030_s8 + $0x20] sm:$0xff] %vm4327_vm11, %v1633_v1  ;;  %v2078_v8 = vsub.f32 %v1633_v1, %v3089_v30  ;;  %vm4341_vm11 = vmmov %vm4320_vm1  ;;  %v3099_v30 = vld [vmem:[%s3220_s29 + $0x70] sm:$0xff] }
 0x2df   : > { %v2143_v17 = vmul.f32 %v2079_v45, %v2079_v45 }
 0x2e0   : > { %v2142_v19 = vmul.f32 %v2078_v8, %v2078_v8 }
 0x2e1   : > { %v2211_v28 = vsel %vm4329_vm5, %v2143_v17, 0.0  ;;  %vm4343_vm5 = vmmov %vm4320_vm1 }
 0x2e2   : > { %v2209_v22 = vsel %vm4328_vm6, %v2142_v19, 0.0  ;;  %vm4342_vm6 = vmmov %vm4320_vm1 }
 0x2e3   : > { %v2210_v58 = vadd.f32 %v2209_v22, %v2208_v11 }
 0x2e4   : > { %v2872_v37 = vpop.f32.mrb[6].mxu0 }
 0x2e5   : > { %1939 = vst.msk [vmem:[%s4030_s8 + $0x38] sm:$0xff] %vm4330_vm9, %v2872_v37  ;;  %v2081_v53 = vsub.f32 %v2872_v37, %v3090_v39  ;;  %v1643_v61 = vpop.f32.mrb[7].mxu0  ;;  %v2212_v20 = vadd.f32 %v2211_v28, %v2210_v58  ;;  %vm4344_vm9 = vmmov %vm4320_vm1  ;;  %v3100_v58 = vld [vmem:[%s3220_s29 + $0x88] sm:$0xff] }
 0x2e6   : > { %1938 = vst.msk [vmem:[%s4030_s8 + $0x30] sm:$0xff] %vm4331_vm12, %v1643_v61  ;;  %v2080_v3 = vsub.f32 %v1643_v61, %v3091_v62  ;;  %vm4345_vm12 = vmmov %vm4320_vm1 }
 0x2e7   : > { %v2145_v27 = vmul.f32 %v2081_v53, %v2081_v53  ;;  %v3101_v53 = vld [vmem:[%s3220_s29 + $0x80] sm:$0xff] }
 0x2e8   : > { %v2144_v33 = vmul.f32 %v2080_v3, %v2080_v3 }
 0x2e9   : > { %v2215_v57 = vsel %vm4333_vm15, %v2145_v27, 0.0  ;;  %vm4347_vm15 = vmmov %vm4320_vm1 }
 0x2ea   : > { %v2213_v51 = vsel %vm4332_vm14, %v2144_v33, 0.0  ;;  %vm4346_vm14 = vmmov %vm4320_vm1 }
 0x2eb   : > { %v2214_v50 = vadd.f32 %v2213_v51, %v2212_v20 }
 0x2ec   : > { %v2875_v52 = vpop.f32.mrb[8].mxu0 }
 0x2ed   : > { %1941 = vst.msk [vmem:[%s4030_s8 + $0x48] sm:$0xff] %vm4334_vm7, %v2875_v52  ;;  %v2083_v34 = vsub.f32 %v2875_v52, %v3092_v4  ;;  %v1653_v38 = vpop.f32.mrb[9].mxu0  ;;  %v2216_v26 = vadd.f32 %v2215_v57, %v2214_v50  ;;  %vm4348_vm7 = vmmov %vm4320_vm1  ;;  %v3102_v50 = vld [vmem:[%s3220_s29 + $0x98] sm:$0xff] }
 0x2ee   : > { %1940 = vst.msk [vmem:[%s4030_s8 + $0x40] sm:$0xff] %vm4320_vm1, %v1653_v38  ;;  %v2082_v18 = vsub.f32 %v1653_v38, %v3093_v36 }
 0x2ef   : > { %v2147_v13 = vmul.f32 %v2083_v34, %v2083_v34  ;;  %v3103_v34 = vld [vmem:[%s3220_s29 + $0x90] sm:$0xff] }
 0x2f0   : > { %v2146_v24 = vmul.f32 %v2082_v18, %v2082_v18 }
 0x2f1   : > { %v2219_v48 = vsel %vm4336_vm2, %v2147_v13, 0.0  ;;  %vm4350_vm2 = vmmov %vm4320_vm1 }
 0x2f2   : > { %v2217_v10 = vsel %vm4335_vm8, %v2146_v24, 0.0  ;;  %vm4349_vm8 = vmmov %vm4320_vm1 }
 0x2f3   : > { %v2218_v43 = vadd.f32 %v2217_v10, %v2216_v26 }
 0x2f4   : > { %v2878_v32 = vpop.f32.mrb[10].mxu0 }
 0x2f5   : > { %1943 = vst.msk [vmem:[%s4030_s8 + $0x58] sm:$0xff] %vm4337_vm13, %v2878_v32  ;;  %v2085_v31 = vsub.f32 %v2878_v32, %v3094_v25  ;;  %v1663_v54 = vpop.f32.mrb[11].mxu0  ;;  %v2220_v59 = vadd.f32 %v2219_v48, %v2218_v43  ;;  %vm4351_vm13 = vmmov %vm4320_vm1  ;;  %v3104_v43 = vld [vmem:[%s3220_s29 + $0xa8] sm:$0xff] }
 0x2f6   : > { %1942 = vst.msk [vmem:[%s4030_s8 + $0x50] sm:$0xff] %vm4338_vm3, %v1663_v54  ;;  %v2084_v0 = vsub.f32 %v1663_v54, %v3095_v56  ;;  %vm4352_vm3 = vmmov %vm4320_vm1 }
 0x2f7   : > { %v2149_v5 = vmul.f32 %v2085_v31, %v2085_v31  ;;  %v3105_v31 = vld [vmem:[%s3220_s29 + $0xa0] sm:$0xff] }
 0x2f8   : > { %v2148_v7 = vmul.f32 %v2084_v0, %v2084_v0 }
 0x2f9   : > { %v2223_v60 = vsel %vm4340_vm10, %v2149_v5, 0.0  ;;  %vm4354_vm10 = vmmov %vm4320_vm1 }
 0x2fa   : > { %v2221_v23 = vsel %vm4339_vm4, %v2148_v7, 0.0  ;;  %vm4353_vm4 = vmmov %vm4320_vm1 }
 0x2fb   : > { %v2222_v29 = vadd.f32 %v2221_v23, %v2220_v59 }
 0x2fc   : > { %v2881_v55 = vpop.f32.mrb[12].mxu0 }
 0x2fd   : > { %1945 = vst.msk [vmem:[%s4030_s8 + $0x68] sm:$0xff] %vm4341_vm11, %v2881_v55  ;;  %v2087_v14 = vsub.f32 %v2881_v55, %v3096_v15  ;;  %v1673_v41 = vpop.f32.mrb[13].mxu0  ;;  %v2224_v6 = vadd.f32 %v2223_v60, %v2222_v29  ;;  %vm4355_vm11 = vmmov %vm4320_vm1  ;;  %v3106_v29 = vld [vmem:[%s3220_s29 + $0xb8] sm:$0xff] }
 0x2fe   : > { %1944 = vst.msk [vmem:[%s4030_s8 + $0x60] sm:$0xff] %vm4342_vm6, %v1673_v41  ;;  %v2086_v21 = vsub.f32 %v1673_v41, %v3097_v40  ;;  %vm4356_vm6 = vmmov %vm4320_vm1 }
 0x2ff   : > { %v2151_v44 = vmul.f32 %v2087_v14, %v2087_v14  ;;  %v3107_v14 = vld [vmem:[%s3220_s29 + $0xb0] sm:$0xff] }
 0x300   : > { %v2150_v12 = vmul.f32 %v2086_v21, %v2086_v21 }
 0x301   : > { %v2227_v63 = vsel %vm4344_vm9, %v2151_v44, 0.0  ;;  %vm4358_vm9 = vmmov %vm4320_vm1 }
 0x302   : > { %v2225_v9 = vsel %vm4343_vm5, %v2150_v12, 0.0  ;;  %vm4357_vm5 = vmmov %vm4320_vm1 }
 0x303   : > { %v2226_v46 = vadd.f32 %v2225_v9, %v2224_v6 }
 0x304   : > { %v2884_v35 = vpop.f32.mrb[14].mxu0 }
 0x305   : > { %1947 = vst.msk [vmem:[%s4030_s8 + $0x78] sm:$0xff] %vm4345_vm12, %v2884_v35  ;;  %v2089_v45 = vsub.f32 %v2884_v35, %v3098_v16  ;;  %v1683_v1 = vpop.f32.mrb[15].mxu0  ;;  %v2228_v11 = vadd.f32 %v2227_v63, %v2226_v46  ;;  %vm4359_vm12 = vmmov %vm4320_vm1  ;;  %v3108_v46 = vld [vmem:[%s3220_s29 + $0xc8] sm:$0xff] }
 0x306   : > { %1946 = vst.msk [vmem:[%s4030_s8 + $0x70] sm:$0xff] %vm4346_vm14, %v1683_v1  ;;  %v2088_v8 = vsub.f32 %v1683_v1, %v3099_v30  ;;  %vm4360_vm14 = vmmov %vm4320_vm1 }
 0x307   : > { %v2153_v17 = vmul.f32 %v2089_v45, %v2089_v45  ;;  %v3109_v45 = vld [vmem:[%s3220_s29 + $0xc0] sm:$0xff] }
 0x308   : > { %v2152_v19 = vmul.f32 %v2088_v8, %v2088_v8  ;;  %v2887_v22 = vpop.f32.mrb[16].mxu0 }
 0x309   : > { %1949 = vst.msk [vmem:[%s4030_s8 + $0x88] sm:$0xff] %vm4347_vm15, %v2887_v22  ;;  %v2091_v28 = vsub.f32 %v2887_v22, %v3100_v58  ;;  %v1693_v37 = vpop.f32.mrb[17].mxu0  ;;  %v2231_v62 = vsel %vm4349_vm8, %v2153_v17, 0.0  ;;  %vm4361_vm15 = vmmov %vm4320_vm1  ;;  %v3110_v58 = vld [vmem:[%s3220_s29 + $0xd8] sm:$0xff] }
 0x30a   : > { %v2229_v39 = vsel %vm4348_vm7, %v2152_v19, 0.0  ;;  %1948 = vst.msk [vmem:[%s4030_s8 + $0x80] sm:$0xff] %vm4320_vm1, %v1693_v37  ;;  %v2090_v61 = vsub.f32 %v1693_v37, %v3101_v53  ;;  %vm4362_vm7 = vmmov %vm4320_vm1  ;;  %v3111_v53 = vld [vmem:[%s3220_s29 + $0xd0] sm:$0xff] }
 0x30b   : > { %v2230_v20 = vadd.f32 %v2229_v39, %v2228_v11  ;;  %v2155_v3 = vmul.f32 %v2091_v28, %v2091_v28  ;;  %vm4363_vm8 = vmmov %vm4320_vm1 }
 0x30c   : > { %v2154_v27 = vmul.f32 %v2090_v61, %v2090_v61  ;;  %v2890_v33 = vpop.f32.mrb[18].mxu0 }
 0x30d   : > { %v2232_v51 = vadd.f32 %v2231_v62, %v2230_v20  ;;  %1951 = vst.msk [vmem:[%s4030_s8 + $0x98] sm:$0xff] %vm4350_vm2, %v2890_v33  ;;  %v2093_v57 = vsub.f32 %v2890_v33, %v3102_v50  ;;  %v1703_v52 = vpop.f32.mrb[19].mxu0  ;;  %v2235_v36 = vsel %vm4353_vm4, %v2155_v3, 0.0  ;;  %vm4364_vm2 = vmmov %vm4320_vm1  ;;  %v3112_v50 = vld [vmem:[%s3220_s29 + $0xe8] sm:$0xff] }
 0x30e   : > { %v2233_v4 = vsel %vm4351_vm13, %v2154_v27, 0.0  ;;  %1950 = vst.msk [vmem:[%s4030_s8 + $0x90] sm:$0xff] %vm4352_vm3, %v1703_v52  ;;  %v2092_v38 = vsub.f32 %v1703_v52, %v3103_v34  ;;  %vm4365_vm13 = vmmov %vm4320_vm1  ;;  %v3113_v34 = vld [vmem:[%s3220_s29 + $0xe0] sm:$0xff] }
 0x30f   : > { %v2234_v26 = vadd.f32 %v2233_v4, %v2232_v51  ;;  %v2157_v18 = vmul.f32 %v2093_v57, %v2093_v57  ;;  %vm4366_vm3 = vmmov %vm4320_vm1 }
 0x310   : > { %v2156_v13 = vmul.f32 %v2092_v38, %v2092_v38  ;;  %v2893_v24 = vpop.f32.mrb[20].mxu0  ;;  %vm4367_vm4 = vmmov %vm4320_vm1 }
 0x311   : > { %v2236_v10 = vadd.f32 %v2235_v36, %v2234_v26  ;;  %1953 = vst.msk [vmem:[%s4030_s8 + $0xa8] sm:$0xff] %vm4354_vm10, %v2893_v24  ;;  %v2095_v48 = vsub.f32 %v2893_v24, %v3104_v43  ;;  %v1713_v32 = vpop.f32.mrb[21].mxu0  ;;  %v2239_v56 = vsel %vm4357_vm5, %v2157_v18, 0.0  ;;  %vm4368_vm10 = vmmov %vm4320_vm1  ;;  %v3114_v43 = vld [vmem:[%s3220_s29 + $0xf8] sm:$0xff] }
 0x312   : > { %v2237_v25 = vsel %vm4355_vm11, %v2156_v13, 0.0  ;;  %1952 = vst.msk [vmem:[%s4030_s8 + $0xa0] sm:$0xff] %vm4356_vm6, %v1713_v32  ;;  %v2094_v54 = vsub.f32 %v1713_v32, %v3105_v31  ;;  %vm4369_vm11 = vmmov %vm4320_vm1  ;;  %v3115_v31 = vld [vmem:[%s3220_s29 + $0xf0] sm:$0xff] }
 0x313   : > { %v2238_v59 = vadd.f32 %v2237_v25, %v2236_v10  ;;  %v2159_v0 = vmul.f32 %v2095_v48, %v2095_v48  ;;  %vm4370_vm6 = vmmov %vm4320_vm1 }
 0x314   : > { %v2158_v5 = vmul.f32 %v2094_v54, %v2094_v54  ;;  %v2896_v7 = vpop.f32.mrb[22].mxu0  ;;  %vm4371_vm5 = vmmov %vm4320_vm1 }
 0x315   : > { %v2240_v23 = vadd.f32 %v2239_v56, %v2238_v59  ;;  %1955 = vst.msk [vmem:[%s4030_s8 + $0xb8] sm:$0xff] %vm4358_vm9, %v2896_v7  ;;  %v2097_v60 = vsub.f32 %v2896_v7, %v3106_v29  ;;  %v1723_v55 = vpop.f32.mrb[23].mxu0  ;;  %v2243_v40 = vsel %vm4361_vm15, %v2159_v0, 0.0  ;;  %vm4372_vm9 = vmmov %vm4320_vm1  ;;  %v3116_v29 = vld [vmem:[%s3220_s29 + $0x108] sm:$0xff] }
 0x316   : > { %v2241_v15 = vsel %vm4359_vm12, %v2158_v5, 0.0  ;;  %1954 = vst.msk [vmem:[%s4030_s8 + $0xb0] sm:$0xff] %vm4360_vm14, %v1723_v55  ;;  %v2096_v41 = vsub.f32 %v1723_v55, %v3107_v14  ;;  %vm4373_vm12 = vmmov %vm4320_vm1  ;;  %v3117_v14 = vld [vmem:[%s3220_s29 + $0x100] sm:$0xff] }
 0x317   : > { %v2242_v6 = vadd.f32 %v2241_v15, %v2240_v23  ;;  %v2161_v21 = vmul.f32 %v2097_v60, %v2097_v60  ;;  %vm4374_vm14 = vmmov %vm4320_vm1 }
 0x318   : > { %v2160_v44 = vmul.f32 %v2096_v41, %v2096_v41  ;;  %v2899_v12 = vpop.f32.mrb[24].mxu0  ;;  %vm4375_vm15 = vmmov %vm4320_vm1 }
 0x319   : > { %v2244_v9 = vadd.f32 %v2243_v40, %v2242_v6  ;;  %1957 = vst.msk [vmem:[%s4030_s8 + $0xc8] sm:$0xff] %vm4362_vm7, %v2899_v12  ;;  %v2099_v63 = vsub.f32 %v2899_v12, %v3108_v46  ;;  %v1733_v35 = vpop.f32.mrb[25].mxu0  ;;  %v2247_v30 = vsel %vm4364_vm2, %v2161_v21, 0.0  ;;  %vm4376_vm7 = vmmov %vm4320_vm1  ;;  %v3118_v46 = vld [vmem:[%s3220_s29 + $0x118] sm:$0xff] }
 0x31a   : > { %v2245_v16 = vsel %vm4320_vm1, %v2160_v44, 0.0  ;;  %1956 = vst.msk [vmem:[%s4030_s8 + $0xc0] sm:$0xff] %vm4363_vm8, %v1733_v35  ;;  %v2098_v1 = vsub.f32 %v1733_v35, %v3109_v45  ;;  %vm4377_vm8 = vmmov %vm4320_vm1  ;;  %v3119_v45 = vld [vmem:[%s3220_s29 + $0x110] sm:$0xff] }
 0x31b   : > { %v2246_v11 = vadd.f32 %v2245_v16, %v2244_v9  ;;  %v2163_v8 = vmul.f32 %v2099_v63, %v2099_v63  ;;  %vm4378_vm2 = vmmov %vm4320_vm1 }
 0x31c   : > { %v2162_v17 = vmul.f32 %v2098_v1, %v2098_v1  ;;  %v2902_v19 = vpop.f32.mrb[26].mxu0 }
 0x31d   : > { %v2248_v22 = vadd.f32 %v2247_v30, %v2246_v11  ;;  %1959 = vst.msk [vmem:[%s4030_s8 + $0xd8] sm:$0xff] %vm4365_vm13, %v2902_v19  ;;  %v2101_v28 = vsub.f32 %v2902_v19, %v3110_v58  ;;  %v1743_v37 = vpop.f32.mrb[27].mxu0  ;;  %v2251_v62 = vsel %vm4368_vm10, %v2163_v8, 0.0  ;;  %vm4379_vm13 = vmmov %vm4320_vm1  ;;  %v3120_v58 = vld [vmem:[%s3220_s29 + $0x128] sm:$0xff] }
 0x31e   : > { %v2249_v39 = vsel %vm4366_vm3, %v2162_v17, 0.0  ;;  %1958 = vst.msk [vmem:[%s4030_s8 + $0xd0] sm:$0xff] %vm4367_vm4, %v1743_v37  ;;  %v2100_v61 = vsub.f32 %v1743_v37, %v3111_v53  ;;  %vm4380_vm3 = vmmov %vm4320_vm1  ;;  %v3121_v53 = vld [vmem:[%s3220_s29 + $0x120] sm:$0xff] }
 0x31f   : > { %v2250_v20 = vadd.f32 %v2249_v39, %v2248_v22  ;;  %v2165_v3 = vmul.f32 %v2101_v28, %v2101_v28  ;;  %vm4381_vm4 = vmmov %vm4320_vm1 }
 0x320   : > { %v2164_v27 = vmul.f32 %v2100_v61, %v2100_v61  ;;  %v2905_v33 = vpop.f32.mrb[28].mxu0  ;;  %vm4382_vm10 = vmmov %vm4320_vm1 }
 0x321   : > { %v2252_v51 = vadd.f32 %v2251_v62, %v2250_v20  ;;  %1961 = vst.msk [vmem:[%s4030_s8 + $0xe8] sm:$0xff] %vm4369_vm11, %v2905_v33  ;;  %v2103_v57 = vsub.f32 %v2905_v33, %v3112_v50  ;;  %v1753_v52 = vpop.f32.mrb[29].mxu0  ;;  %v2255_v36 = vsel %vm4372_vm9, %v2165_v3, 0.0  ;;  %vm4383_vm11 = vmmov %vm4320_vm1  ;;  %v3122_v50 = vld [vmem:[%s3220_s29 + $0x138] sm:$0xff] }
 0x322   : > { %v2253_v4 = vsel %vm4370_vm6, %v2164_v27, 0.0  ;;  %1960 = vst.msk [vmem:[%s4030_s8 + $0xe0] sm:$0xff] %vm4371_vm5, %v1753_v52  ;;  %v2102_v38 = vsub.f32 %v1753_v52, %v3113_v34  ;;  %vm4384_vm6 = vmmov %vm4320_vm1  ;;  %v3123_v34 = vld [vmem:[%s3220_s29 + $0x130] sm:$0xff] }
 0x323   : > { %v2254_v26 = vadd.f32 %v2253_v4, %v2252_v51  ;;  %v2167_v18 = vmul.f32 %v2103_v57, %v2103_v57  ;;  %vm4385_vm5 = vmmov %vm4320_vm1 }
 0x324   : > { %v2166_v13 = vmul.f32 %v2102_v38, %v2102_v38  ;;  %v2908_v24 = vpop.f32.mrb[30].mxu0  ;;  %vm4386_vm9 = vmmov %vm4320_vm1 }
 0x325   : > { %v2256_v10 = vadd.f32 %v2255_v36, %v2254_v26  ;;  %1963 = vst.msk [vmem:[%s4030_s8 + $0xf8] sm:$0xff] %vm4373_vm12, %v2908_v24  ;;  %v2105_v48 = vsub.f32 %v2908_v24, %v3114_v43  ;;  %v1763_v32 = vpop.f32.mrb[31].mxu0  ;;  %v2259_v56 = vsel %vm4376_vm7, %v2167_v18, 0.0  ;;  %vm4387_vm12 = vmmov %vm4320_vm1  ;;  %v3124_v43 = vld [vmem:[%s3220_s29 + $0x148] sm:$0xff] }
 0x326   : > { %v2257_v25 = vsel %vm4374_vm14, %v2166_v13, 0.0  ;;  %1962 = vst.msk [vmem:[%s4030_s8 + $0xf0] sm:$0xff] %vm4375_vm15, %v1763_v32  ;;  %v2104_v54 = vsub.f32 %v1763_v32, %v3115_v31  ;;  %vm4388_vm14 = vmmov %vm4320_vm1  ;;  %v3125_v31 = vld [vmem:[%s3220_s29 + $0x140] sm:$0xff] }
 0x327   : > { %v2258_v59 = vadd.f32 %v2257_v25, %v2256_v10  ;;  %v2169_v0 = vmul.f32 %v2105_v48, %v2105_v48  ;;  %vm4389_vm15 = vmmov %vm4320_vm1 }
 0x328   : > { %v2168_v5 = vmul.f32 %v2104_v54, %v2104_v54  ;;  %v2911_v7 = vpop.f32.mrb[32].mxu0  ;;  %vm4390_vm7 = vmmov %vm4320_vm1 }
 0x329   : > { %v2260_v23 = vadd.f32 %v2259_v56, %v2258_v59  ;;  %1965 = vst.msk [vmem:[%s4030_s8 + $0x108] sm:$0xff] %vm4320_vm1, %v2911_v7  ;;  %v2107_v60 = vsub.f32 %v2911_v7, %v3116_v29  ;;  %v1773_v55 = vpop.f32.mrb[33].mxu0  ;;  %v2263_v40 = vsel %vm4379_vm13, %v2169_v0, 0.0  ;;  %vm4393_vm13 = vmmov %vm4320_vm1  ;;  %v3126_v29 = vld [vmem:[%s3220_s29 + $0x158] sm:$0xff] }
 0x32a   : > { %v2261_v15 = vsel %vm4377_vm8, %v2168_v5, 0.0  ;;  %1964 = vst.msk [vmem:[%s4030_s8 + $0x100] sm:$0xff] %vm4378_vm2, %v1773_v55  ;;  %v2106_v41 = vsub.f32 %v1773_v55, %v3117_v14  ;;  %vm4391_vm8 = vmmov %vm4320_vm1  ;;  %v3127_v14 = vld [vmem:[%s3220_s29 + $0x150] sm:$0xff] }
 0x32b   : > { %v2262_v6 = vadd.f32 %v2261_v15, %v2260_v23  ;;  %v2171_v21 = vmul.f32 %v2107_v60, %v2107_v60  ;;  %vm4392_vm2 = vmmov %vm4320_vm1 }
 0x32c   : > { %v2170_v44 = vmul.f32 %v2106_v41, %v2106_v41  ;;  %v2914_v12 = vpop.f32.mrb[34].mxu0 }
 0x32d   : > { %v2264_v9 = vadd.f32 %v2263_v40, %v2262_v6  ;;  %1967 = vst.msk [vmem:[%s4030_s8 + $0x118] sm:$0xff] %vm4380_vm3, %v2914_v12  ;;  %v2109_v63 = vsub.f32 %v2914_v12, %v3118_v46  ;;  %v1783_v35 = vpop.f32.mrb[35].mxu0  ;;  %v2267_v30 = vsel %vm4383_vm11, %v2171_v21, 0.0  ;;  %vm4394_vm3 = vmmov %vm4320_vm1  ;;  %v3128_v46 = vld [vmem:[%s3220_s29 + $0x168] sm:$0xff] }
 0x32e   : > { %v2265_v16 = vsel %vm4381_vm4, %v2170_v44, 0.0  ;;  %1966 = vst.msk [vmem:[%s4030_s8 + $0x110] sm:$0xff] %vm4382_vm10, %v1783_v35  ;;  %v2108_v1 = vsub.f32 %v1783_v35, %v3119_v45  ;;  %vm4395_vm4 = vmmov %vm4320_vm1  ;;  %v3129_v45 = vld [vmem:[%s3220_s29 + $0x160] sm:$0xff] }
 0x32f   : > { %v2266_v11 = vadd.f32 %v2265_v16, %v2264_v9  ;;  %v2173_v8 = vmul.f32 %v2109_v63, %v2109_v63  ;;  %vm4396_vm10 = vmmov %vm4320_vm1 }
 0x330   : > { %v2172_v17 = vmul.f32 %v2108_v1, %v2108_v1  ;;  %v2917_v19 = vpop.f32.mrb[36].mxu0  ;;  %vm4397_vm11 = vmmov %vm4320_vm1 }
 0x331   : > { %v2268_v22 = vadd.f32 %v2267_v30, %v2266_v11  ;;  %1969 = vst.msk [vmem:[%s4030_s8 + $0x128] sm:$0xff] %vm4384_vm6, %v2917_v19  ;;  %v2111_v28 = vsub.f32 %v2917_v19, %v3120_v58  ;;  %v1793_v37 = vpop.f32.mrb[37].mxu0  ;;  %v2271_v62 = vsel %vm4387_vm12, %v2173_v8, 0.0  ;;  %vm4398_vm6 = vmmov %vm4320_vm1  ;;  %v3130_v58 = vld [vmem:[%s3220_s29 + $0x178] sm:$0xff] }
 0x332   : > { %v2269_v39 = vsel %vm4385_vm5, %v2172_v17, 0.0  ;;  %1968 = vst.msk [vmem:[%s4030_s8 + $0x120] sm:$0xff] %vm4386_vm9, %v1793_v37  ;;  %v2110_v61 = vsub.f32 %v1793_v37, %v3121_v53  ;;  %vm4399_vm5 = vmmov %vm4320_vm1  ;;  %v3131_v53 = vld [vmem:[%s3220_s29 + $0x170] sm:$0xff] }
 0x333   : > { %v2270_v20 = vadd.f32 %v2269_v39, %v2268_v22  ;;  %v2175_v3 = vmul.f32 %v2111_v28, %v2111_v28  ;;  %vm4400_vm9 = vmmov %vm4320_vm1 }
 0x334   : > { %v2174_v27 = vmul.f32 %v2110_v61, %v2110_v61  ;;  %v2920_v33 = vpop.f32.mrb[38].mxu0  ;;  %vm4401_vm12 = vmmov %vm4320_vm1 }
 0x335   : > { %v2272_v51 = vadd.f32 %v2271_v62, %v2270_v20  ;;  %1971 = vst.msk [vmem:[%s4030_s8 + $0x138] sm:$0xff] %vm4388_vm14, %v2920_v33  ;;  %v2113_v57 = vsub.f32 %v2920_v33, %v3122_v50  ;;  %v1803_v52 = vpop.f32.mrb[39].mxu0  ;;  %v2275_v36 = vsel %vm4320_vm1, %v2175_v3, 0.0  ;;  %vm4402_vm14 = vmmov %vm4320_vm1  ;;  %v3132_v50 = vld [vmem:[%s3220_s29 + $0x188] sm:$0xff] }
 0x336   : > { %v2273_v4 = vsel %vm4389_vm15, %v2174_v27, 0.0  ;;  %1970 = vst.msk [vmem:[%s4030_s8 + $0x130] sm:$0xff] %vm4390_vm7, %v1803_v52  ;;  %v2112_v38 = vsub.f32 %v1803_v52, %v3123_v34  ;;  %vm4403_vm15 = vmmov %vm4320_vm1  ;;  %v3133_v34 = vld [vmem:[%s3220_s29 + $0x180] sm:$0xff] }
 0x337   : > { %v2274_v26 = vadd.f32 %v2273_v4, %v2272_v51  ;;  %v2177_v18 = vmul.f32 %v2113_v57, %v2113_v57  ;;  %vm4404_vm7 = vmmov %vm4320_vm1 }
 0x338   : > { %v2176_v13 = vmul.f32 %v2112_v38, %v2112_v38  ;;  %v2923_v24 = vpop.f32.mrb[40].mxu0 }
 0x339   : > { %v2276_v10 = vadd.f32 %v2275_v36, %v2274_v26  ;;  %1973 = vst.msk [vmem:[%s4030_s8 + $0x148] sm:$0xff] %vm4391_vm8, %v2923_v24  ;;  %v2115_v48 = vsub.f32 %v2923_v24, %v3124_v43  ;;  %v1813_v32 = vpop.f32.mrb[41].mxu0  ;;  %v2279_v56 = vsel %vm4394_vm3, %v2177_v18, 0.0  ;;  %vm4405_vm8 = vmmov %vm4320_vm1  ;;  %v3134_v43 = vld [vmem:[%s3220_s29 + $0x198] sm:$0xff] }
 0x33a   : > { %v2277_v25 = vsel %vm4392_vm2, %v2176_v13, 0.0  ;;  %1972 = vst.msk [vmem:[%s4030_s8 + $0x140] sm:$0xff] %vm4393_vm13, %v1813_v32  ;;  %v2114_v54 = vsub.f32 %v1813_v32, %v3125_v31  ;;  %vm4406_vm2 = vmmov %vm4320_vm1  ;;  %v3135_v31 = vld [vmem:[%s3220_s29 + $0x190] sm:$0xff] }
 0x33b   : > { %v2278_v59 = vadd.f32 %v2277_v25, %v2276_v10  ;;  %v2179_v0 = vmul.f32 %v2115_v48, %v2115_v48  ;;  %vm4407_vm13 = vmmov %vm4320_vm1 }
 0x33c   : > { %v2178_v5 = vmul.f32 %v2114_v54, %v2114_v54  ;;  %v2926_v7 = vpop.f32.mrb[42].mxu0  ;;  %vm4408_vm3 = vmmov %vm4320_vm1 }
 0x33d   : > { %v2280_v23 = vadd.f32 %v2279_v56, %v2278_v59  ;;  %1975 = vst.msk [vmem:[%s4030_s8 + $0x158] sm:$0xff] %vm4395_vm4, %v2926_v7  ;;  %v2117_v60 = vsub.f32 %v2926_v7, %v3126_v29  ;;  %v1823_v55 = vpop.f32.mrb[43].mxu0  ;;  %v2283_v40 = vsel %vm4398_vm6, %v2179_v0, 0.0  ;;  %vm4409_vm4 = vmmov %vm4320_vm1  ;;  %v3136_v29 = vld [vmem:[%s3220_s29 + $0x1a8] sm:$0xff] }
 0x33e   : > { %v2281_v15 = vsel %vm4396_vm10, %v2178_v5, 0.0  ;;  %1974 = vst.msk [vmem:[%s4030_s8 + $0x150] sm:$0xff] %vm4397_vm11, %v1823_v55  ;;  %v2116_v41 = vsub.f32 %v1823_v55, %v3127_v14  ;;  %vm4410_vm10 = vmmov %vm4320_vm1  ;;  %v3137_v14 = vld [vmem:[%s3220_s29 + $0x1a0] sm:$0xff] }
 0x33f   : > { %v2282_v6 = vadd.f32 %v2281_v15, %v2280_v23  ;;  %v2181_v21 = vmul.f32 %v2117_v60, %v2117_v60  ;;  %vm4411_vm11 = vmmov %vm4320_vm1 }
 0x340   : > { %v2180_v44 = vmul.f32 %v2116_v41, %v2116_v41  ;;  %v2929_v12 = vpop.f32.mrb[44].mxu0  ;;  %vm4412_vm6 = vmmov %vm4320_vm1 }
 0x341   : > { %v2284_v9 = vadd.f32 %v2283_v40, %v2282_v6  ;;  %1977 = vst.msk [vmem:[%s4030_s8 + $0x168] sm:$0xff] %vm4399_vm5, %v2929_v12  ;;  %v2119_v63 = vsub.f32 %v2929_v12, %v3128_v46  ;;  %v1833_v35 = vpop.f32.mrb[45].mxu0  ;;  %v2287_v30 = vsel %vm4402_vm14, %v2181_v21, 0.0  ;;  %vm4413_vm5 = vmmov %vm4320_vm1  ;;  %v3138_v46 = vld [vmem:[%s3220_s29 + $0x1b8] sm:$0xff] }
 0x342   : > { %v2285_v16 = vsel %vm4400_vm9, %v2180_v44, 0.0  ;;  %1976 = vst.msk [vmem:[%s4030_s8 + $0x160] sm:$0xff] %vm4401_vm12, %v1833_v35  ;;  %v2118_v1 = vsub.f32 %v1833_v35, %v3129_v45  ;;  %vm4414_vm9 = vmmov %vm4320_vm1  ;;  %v3139_v45 = vld [vmem:[%s3220_s29 + $0x1b0] sm:$0xff] }
 0x343   : > { %v2286_v11 = vadd.f32 %v2285_v16, %v2284_v9  ;;  %v2183_v8 = vmul.f32 %v2119_v63, %v2119_v63  ;;  %vm4415_vm12 = vmmov %vm4320_vm1 }
 0x344   : > { %v2182_v17 = vmul.f32 %v2118_v1, %v2118_v1  ;;  %v2932_v19 = vpop.f32.mrb[46].mxu0  ;;  %vm4416_vm14 = vmmov %vm4320_vm1 }
 0x345   : > { %v2288_v22 = vadd.f32 %v2287_v30, %v2286_v11  ;;  %1979 = vst.msk [vmem:[%s4030_s8 + $0x178] sm:$0xff] %vm4403_vm15, %v2932_v19  ;;  %v2121_v28 = vsub.f32 %v2932_v19, %v3130_v58  ;;  %v1843_v37 = vpop.f32.mrb[47].mxu0  ;;  %v2291_v62 = vsel %vm4405_vm8, %v2183_v8, 0.0  ;;  %vm4417_vm15 = vmmov %vm4320_vm1  ;;  %v3140_v58 = vld [vmem:[%s3220_s29 + $0x1c8] sm:$0xff] }
 0x346   : > { %v2289_v39 = vsel %vm4404_vm7, %v2182_v17, 0.0  ;;  %1978 = vst.msk [vmem:[%s4030_s8 + $0x170] sm:$0xff] %vm4320_vm1, %v1843_v37  ;;  %v2120_v61 = vsub.f32 %v1843_v37, %v3131_v53  ;;  %vm4418_vm7 = vmmov %vm4320_vm1  ;;  %v3141_v53 = vld [vmem:[%s3220_s29 + $0x1c0] sm:$0xff] }
 0x347   : > { %v2290_v20 = vadd.f32 %v2289_v39, %v2288_v22  ;;  %v2185_v3 = vmul.f32 %v2121_v28, %v2121_v28  ;;  %vm4419_vm8 = vmmov %vm4320_vm1 }
 0x348   : > { %v2184_v27 = vmul.f32 %v2120_v61, %v2120_v61  ;;  %v2935_v33 = vpop.f32.mrb[48].mxu0 }
 0x349   : > { %v2292_v51 = vadd.f32 %v2291_v62, %v2290_v20  ;;  %1981 = vst.msk [vmem:[%s4030_s8 + $0x188] sm:$0xff] %vm4406_vm2, %v2935_v33  ;;  %v2123_v57 = vsub.f32 %v2935_v33, %v3132_v50  ;;  %v1853_v52 = vpop.f32.mrb[49].mxu0  ;;  %v2295_v36 = vsel %vm4409_vm4, %v2185_v3, 0.0  ;;  %vm4420_vm2 = vmmov %vm4320_vm1  ;;  %v3142_v50 = vld [vmem:[%s3220_s29 + $0x1d8] sm:$0xff] }
 0x34a   : > { %v2293_v4 = vsel %vm4407_vm13, %v2184_v27, 0.0  ;;  %1980 = vst.msk [vmem:[%s4030_s8 + $0x180] sm:$0xff] %vm4408_vm3, %v1853_v52  ;;  %v2122_v38 = vsub.f32 %v1853_v52, %v3133_v34  ;;  %vm4421_vm13 = vmmov %vm4320_vm1  ;;  %v3143_v34 = vld [vmem:[%s3220_s29 + $0x1d0] sm:$0xff] }
 0x34b   : > { %v2294_v26 = vadd.f32 %v2293_v4, %v2292_v51  ;;  %v2187_v18 = vmul.f32 %v2123_v57, %v2123_v57  ;;  %vm4422_vm3 = vmmov %vm4320_vm1 }
 0x34c   : > { %v2186_v13 = vmul.f32 %v2122_v38, %v2122_v38  ;;  %v2938_v24 = vpop.f32.mrb[50].mxu0  ;;  %vm4423_vm4 = vmmov %vm4320_vm1 }
 0x34d   : > { %v2296_v10 = vadd.f32 %v2295_v36, %v2294_v26  ;;  %1983 = vst.msk [vmem:[%s4030_s8 + $0x198] sm:$0xff] %vm4410_vm10, %v2938_v24  ;;  %v2125_v48 = vsub.f32 %v2938_v24, %v3134_v43  ;;  %v1863_v32 = vpop.f32.mrb[51].mxu0  ;;  %v2299_v56 = vsel %vm4413_vm5, %v2187_v18, 0.0  ;;  %vm4424_vm10 = vmmov %vm4320_vm1  ;;  %v3144_v43 = vld [vmem:[%s3220_s29 + $0x1e8] sm:$0xff] }
 0x34e   : > { %v2297_v25 = vsel %vm4411_vm11, %v2186_v13, 0.0  ;;  %1982 = vst.msk [vmem:[%s4030_s8 + $0x190] sm:$0xff] %vm4412_vm6, %v1863_v32  ;;  %v2124_v54 = vsub.f32 %v1863_v32, %v3135_v31  ;;  %vm4425_vm11 = vmmov %vm4320_vm1  ;;  %v3145_v31 = vld [vmem:[%s3220_s29 + $0x1e0] sm:$0xff] }
 0x34f   : > { %v2298_v59 = vadd.f32 %v2297_v25, %v2296_v10  ;;  %v2189_v0 = vmul.f32 %v2125_v48, %v2125_v48  ;;  %vm4426_vm6 = vmmov %vm4320_vm1 }
 0x350   : > { %v2188_v5 = vmul.f32 %v2124_v54, %v2124_v54  ;;  %v2941_v7 = vpop.f32.mrb[52].mxu0  ;;  %vm4427_vm5 = vmmov %vm4320_vm1 }
 0x351   : > { %v2300_v23 = vadd.f32 %v2299_v56, %v2298_v59  ;;  %1985 = vst.msk [vmem:[%s4030_s8 + $0x1a8] sm:$0xff] %vm4414_vm9, %v2941_v7  ;;  %v2127_v60 = vsub.f32 %v2941_v7, %v3136_v29  ;;  %v1873_v55 = vpop.f32.mrb[53].mxu0  ;;  %v2303_v40 = vsel %vm4417_vm15, %v2189_v0, 0.0  ;;  %vm4428_vm9 = vmmov %vm4320_vm1  ;;  %v3146_v29 = vld [vmem:[%s3220_s29 + $0x1f8] sm:$0xff] }
 0x352   : > { %v2301_v15 = vsel %vm4415_vm12, %v2188_v5, 0.0  ;;  %1984 = vst.msk [vmem:[%s4030_s8 + $0x1a0] sm:$0xff] %vm4416_vm14, %v1873_v55  ;;  %v2126_v41 = vsub.f32 %v1873_v55, %v3137_v14  ;;  %vm4429_vm12 = vmmov %vm4320_vm1  ;;  %v3147_v14 = vld [vmem:[%s3220_s29 + $0x1f0] sm:$0xff]  ;;  %s285_s29 = scalar_lea.vmem %s4313_s6, %s4441_s22 }
 0x353   : > { %v2302_v6 = vadd.f32 %v2301_v15, %v2300_v23  ;;  %v2191_v21 = vmul.f32 %v2127_v60, %v2127_v60  ;;  %vm4430_vm14 = vmmov %vm4320_vm1 }
 0x354   : > { %v2190_v44 = vmul.f32 %v2126_v41, %v2126_v41  ;;  %v2944_v12 = vpop.f32.mrb[54].mxu0  ;;  %vm4431_vm15 = vmmov %vm4320_vm1 }
 0x355   : > { %v2304_v9 = vadd.f32 %v2303_v40, %v2302_v6  ;;  %1987 = vst.msk [vmem:[%s4030_s8 + $0x1b8] sm:$0xff] %vm4418_vm7, %v2944_v12  ;;  %v2129_v63 = vsub.f32 %v2944_v12, %v3138_v46  ;;  %v1883_v35 = vpop.f32.mrb[55].mxu0  ;;  %v2307_v30 = vsel %vm4420_vm2, %v2191_v21, 0.0  ;;  %vm4432_vm7 = vmmov %vm4320_vm1 }
 0x356   : > { %v2305_v16 = vsel %vm4320_vm1, %v2190_v44, 0.0  ;;  %1986 = vst.msk [vmem:[%s4030_s8 + $0x1b0] sm:$0xff] %vm4419_vm8, %v1883_v35  ;;  %v2128_v1 = vsub.f32 %v1883_v35, %v3139_v45  ;;  %vm4433_vm8 = vmmov %vm4320_vm1 }
 0x357   : > { %v2306_v11 = vadd.f32 %v2305_v16, %v2304_v9  ;;  %v2193_v8 = vmul.f32 %v2129_v63, %v2129_v63  ;;  %vm4434_vm2 = vmmov %vm4320_vm1 }
 0x358   : > { %v2192_v17 = vmul.f32 %v2128_v1, %v2128_v1  ;;  %v2947_v19 = vpop.f32.mrb[56].mxu0 }
 0x359   : > { %v2308_v22 = vadd.f32 %v2307_v30, %v2306_v11  ;;  %1989 = vst.msk [vmem:[%s4030_s8 + $0x1c8] sm:$0xff] %vm4421_vm13, %v2947_v19  ;;  %v2131_v28 = vsub.f32 %v2947_v19, %v3140_v58  ;;  %v1893_v37 = vpop.f32.mrb[57].mxu0  ;;  %v2311_v62 = vsel %vm4424_vm10, %v2193_v8, 0.0  ;;  %vm4435_vm13 = vmmov %vm4320_vm1  ;;  %vm2339_vm10 = vcmask 0  }
 0x35a   : > { %v2309_v39 = vsel %vm4422_vm3, %v2192_v17, 0.0  ;;  %1988 = vst.msk [vmem:[%s4030_s8 + $0x1c0] sm:$0xff] %vm4423_vm4, %v1893_v37  ;;  %v2130_v61 = vsub.f32 %v1893_v37, %v3141_v53  ;;  %vm4436_vm3 = vmmov %vm4320_vm1 }
 0x35b   : > { %v2310_v20 = vadd.f32 %v2309_v39, %v2308_v22  ;;  %v2195_v3 = vmul.f32 %v2131_v28, %v2131_v28  ;;  %vm4437_vm4 = vmmov %vm4320_vm1 }
 0x35c   : > { %v2194_v27 = vmul.f32 %v2130_v61, %v2130_v61  ;;  %v2950_v33 = vpop.f32.mrb[58].mxu0 }
 0x35d   : > { %v2312_v51 = vadd.f32 %v2311_v62, %v2310_v20  ;;  %1991 = vst.msk [vmem:[%s4030_s8 + $0x1d8] sm:$0xff] %vm4425_vm11, %v2950_v33  ;;  %v2133_v57 = vsub.f32 %v2950_v33, %v3142_v50  ;;  %v1903_v52 = vpop.f32.mrb[59].mxu0  ;;  %v2315_v36 = vsel %vm4428_vm9, %v2195_v3, 0.0 }
 0x35e   : > { %v2313_v4 = vsel %vm4426_vm6, %v2194_v27, 0.0  ;;  %1990 = vst.msk [vmem:[%s4030_s8 + $0x1d0] sm:$0xff] %vm4427_vm5, %v1903_v52  ;;  %v2132_v38 = vsub.f32 %v1903_v52, %v3143_v34 }
 0x35f   : > { %v2314_v26 = vadd.f32 %v2313_v4, %v2312_v51  ;;  %v2197_v18 = vmul.f32 %v2133_v57, %v2133_v57 }
 0x360   : > { %v2196_v13 = vmul.f32 %v2132_v38, %v2132_v38  ;;  %v2953_v24 = vpop.f32.mrb[60].mxu0 }
 0x361   : > { %v2316_v10 = vadd.f32 %v2315_v36, %v2314_v26  ;;  %1993 = vst.msk [vmem:[%s4030_s8 + $0x1e8] sm:$0xff] %vm4429_vm12, %v2953_v24  ;;  %v2135_v48 = vsub.f32 %v2953_v24, %v3144_v43  ;;  %v1913_v32 = vpop.f32.mrb[61].mxu0  ;;  %v2319_v56 = vsel %vm4432_vm7, %v2197_v18, 0.0 }
 0x362   : > { %v2317_v25 = vsel %vm4430_vm14, %v2196_v13, 0.0  ;;  %1992 = vst.msk [vmem:[%s4030_s8 + $0x1e0] sm:$0xff] %vm4431_vm15, %v1913_v32  ;;  %v2134_v54 = vsub.f32 %v1913_v32, %v3145_v31 }
 0x363   : > { %v2318_v59 = vadd.f32 %v2317_v25, %v2316_v10  ;;  %v2199_v0 = vmul.f32 %v2135_v48, %v2135_v48 }
 0x364   : > { %v2198_v5 = vmul.f32 %v2134_v54, %v2134_v54  ;;  %v2956_v7 = vpop.f32.mrb[62].mxu0 }
 0x365   : > { %v2320_v23 = vadd.f32 %v2319_v56, %v2318_v59  ;;  %1995 = vst.msk [vmem:[%s4030_s8 + $0x1f8] sm:$0xff] %vm4320_vm1, %v2956_v7  ;;  %v2137_v60 = vsub.f32 %v2956_v7, %v3146_v29  ;;  %v1923_v55 = vpop.f32.mrb[63].mxu0  ;;  %v2323_v40 = vsel %vm4435_vm13, %v2199_v0, 0.0 }
 0x366   : > { %v2321_v15 = vsel %vm4433_vm8, %v2198_v5, 0.0  ;;  %1994 = vst.msk [vmem:[%s4030_s8 + $0x1f0] sm:$0xff] %vm4434_vm2, %v1923_v55  ;;  %v2136_v41 = vsub.f32 %v1923_v55, %v3147_v14 }
 0x367   : > { %v2322_v6 = vadd.f32 %v2321_v15, %v2320_v23  ;;  %v2201_v21 = vmul.f32 %v2137_v60, %v2137_v60 }
 0x368   : > { %v2200_v44 = vmul.f32 %v2136_v41, %v2136_v41 }
 0x369   : > { %v2324_v12 = vadd.f32 %v2323_v40, %v2322_v6  ;;  %v2327_v63 = vsel %vm4437_vm4, %v2201_v21, 0.0 }
 0x36a   : > { %v2325_v9 = vsel %vm4436_vm3, %v2200_v44, 0.0 }
 0x36b   : > { %v2326_v46 = vadd.f32 %v2325_v9, %v2324_v12 }
 0x36d   : > { %v2328_v35 = vadd.f32 %v2327_v63, %v2326_v46 }
 0x36f   : > { %2329 = vadd.xlane.f32.xlu0 %v2328_v35 }
 0x373   : > { %2033 = vadd.xlane.f32.xlu0 %v3937_v47 }
 0x377   : > { %2038 = vadd.xlane.f32.xlu0 %v3939_v2 }
 0x37b   : > { %2048 = vadd.xlane.f32.xlu0 %v3941_v42 }
 0x37f   : > { %2058 = vadd.xlane.f32.xlu0 %v3943_v49 }
 0x3fc   : > { %v2330_v16 = vpop.xlane.xlu0 %2329 }
 0x3fd   : > { %v2331_v45 = vrot.slane %v2330_v16, 4 }
 0x3ff   : > { %v2332_v1 = vadd.f32 %v2331_v45, %v2330_v16 }
 0x400   : > { %v2034_v11 = vpop.xlane.xlu0 %2033 }
 0x401   : > { %v2333_v30 = vrot.slane %v2332_v1, 2  ;;  %2067 = vst.msk [vmem:[%s4015_s28 + $0x8] sm:$0xff] %vm2065_vm0, %v2034_v11 }
 0x403   : > { %v2334_v8 = vadd.f32 %v2333_v30, %v2332_v1 }
 0x404   : > { %v2039_v17 = vpop.xlane.xlu0 %2038 }
 0x405   : > { %2068 = vst.msk [vmem:[%s4015_s28 + $0x10] sm:$0xff] %vm2065_vm0, %v2039_v17  ;;  %v2335_v47 = vrot.slane %v2334_v8, 1 }
 0x407   : > { %v2336_v19 = vadd.f32 %v2335_v47, %v2334_v8 }
 0x408   : > { %v2049_v2 = vpop.xlane.xlu0 %2048 }
 0x409   : > { %2070 = vst.msk [vmem:[%s4015_s28 + $0x20] sm:$0xff] %vm2065_vm0, %v2049_v2 }
 0x40a   : > { %3069 = vpush %v2336_v19 }
 0x40c   : > { %v2059_v42 = vpop.xlane.xlu0 %2058 }
 0x40d   : > { %2072 = vst.msk [vmem:[%s4015_s28 + $0x30] sm:$0xff] %vm2065_vm0, %v2059_v42 }
 0x43b   : > { %s3070_s9 = spop %3069 }
 0x43c   : > { %v2338_v49 = vstv %s3070_s9 }
 0x43d   : > { %2340 = vst.msk [vmem:[%s285_s29] sm:$0x1] %vm2339_vm10, %v2338_v49 }
 0x43e PF: > { %s17_s21 = sadd.s32 1, %s3154_s21  }
 0x43f   : > { %p14_p5 = scmp.ge.s32.totalorder %s17_s21, 4  }
 0x441   :  { %16 = sbr.rel (!%p14_p5) target bundleno = 1 (0x1), region = 98 }

</bundles_post_ra>
